<compile_context>
chip_gen: v6e
topology: v6e:2x2x1
jax: 0.10.0
libtpu: 0.0.40
codegen_flags: <defaults>
</compile_context>

<pallas_src>
import functools

import jax
import jax.numpy as jnp
from jax.experimental import pallas as pl
from jax.experimental.pallas import tpu as pltpu

NEG_SLOPE = 0.1      # nn.LeakyReLU(negative_slope=0.1)
_NEG_BIG = -1e30     # padded-fc-column logit: exp underflows to exactly 0 in f32


def _round_up(n, m):
    return ((n + m - 1) // m) * m


def _leaky(z):
    # leaky_relu(z, s) == max(z, s*z) for 0 < s < 1.
    return jnp.maximum(z, NEG_SLOPE * z)


def _temporal_attention_kernel(x_ref, w1_ref, b1_ref, w2p_ref, b2_ref, wf_ref, bf_ref,
                               o_ref, *, n_scans, approx_reciprocal):
    """conv1+bn1+leaky -> conv2+bn2+leaky -> fc -> softmax for one batch tile."""
    cp = w1_ref.shape[0]            # padded n_channel*n_pts (multiple of 128)
    n_hid1 = w1_ref.shape[1]        # 128
    n_pairs, _, n_hid2 = w2p_ref.shape  # (ceil(S/2), 256, 64)
    tb = x_ref.shape[0]

    w1 = w1_ref[...]                                           # (CP, 128) bf16, loop-hoisted
    b1 = jnp.broadcast_to(b1_ref[...], (tb, n_hid1))           # hoisted broadcast (not CSE'd)

    def conv1(s):
        xs = x_ref[:, s * cp:(s + 1) * cp].astype(jnp.bfloat16)            # aligned lane slice
        z = jnp.dot(xs, w1, preferred_element_type=jnp.float32) + b1       # conv1 + bn1
        return _leaky(z).astype(jnp.bfloat16)                              # (TB, 128)

    acc = jnp.zeros((tb, n_hid2), jnp.float32)                 # stage-2 f32 accumulator
    for p in range(n_pairs):                                   # static unroll
        a0 = conv1(2 * p)
        if 2 * p + 1 < n_scans:
            a1 = conv1(2 * p + 1)
        else:                                                  # odd-S tail: W2 half is zero
            a1 = jnp.zeros_like(a0)
        a = jnp.concatenate([a0, a1], axis=-1)                 # (TB, 256), lane-aligned concat
        acc = acc + jnp.dot(a, w2p_ref[p], preferred_element_type=jnp.float32)

    h = _leaky(acc + b2_ref[...])                              # bn2 + leaky, (TB, 64) f32
    logits = jnp.dot(h.astype(jnp.bfloat16), wf_ref[...],
                     preferred_element_type=jnp.float32) + bf_ref[...]     # fc, (TB, 128)

    m = jnp.max(logits, axis=-1, keepdims=True)
    e = jnp.exp(logits - m)                                    # padded cols: exactly 0
    denom = jnp.sum(e, axis=-1, keepdims=True)
    o_ref[...] = e * pl.reciprocal(denom, approx=approx_reciprocal)        # softmax(dim=1)


def temporal_attention_forward(x, packed, *, block_b=1024, approx_reciprocal=True):
    """x: (B, n_scans, n_channel, n_pts) f32.  Returns softmax weights (B, n_scans) f32."""
    B, S, C, P = x.shape
    w1, b1, w2p, b2, wf, bf = packed
    cp = C * P
    cp_pad = w1.shape[0]
    nf = wf.shape[1]

    # Free row-major merge of trailing dims; x stays f32 in HBM (bf16 cast happens in-kernel,
    # so there is no standalone XLA cast/pad pass over the dominant array).
    if cp_pad == cp:
        x_flat = x.reshape(B, S * cp)
    else:
        # TODO(synk): lane-padding for non-128-aligned C*P costs one extra HBM pass; ideally the
        # producer hands over a 128-aligned layout.
        x_flat = jnp.pad(x.reshape(B, S, cp),
                         ((0, 0), (0, 0), (0, cp_pad - cp))).reshape(B, S * cp_pad)
    lane_w = S * cp_pad

    # Batch tile: as large as block_b allows, but keep >= 2 grid steps so both v7x TensorCores
    # get work; multiple of 16 (bf16 sublane packing of the intermediates).
    tb = min(block_b, _round_up(-(-B // 2), 16))
    tb = max(8, min(tb, _round_up(B, 8)))
    grid = pl.cdiv(B, tb)

    # Explicit scoped-VMEM budget: double-buffered f32 x tile + output tile + resident weights.
    weight_bytes = (w1.size + w2p.size + wf.size) * 2 + (b1.size + b2.size + bf.size) * 4
    vmem_need = 2 * tb * lane_w * 4 + 2 * tb * nf * 4 + weight_bytes
    vmem_limit = int(min(max(int(vmem_need * 1.5), 32 * 1024 * 1024), 64 * 1024 * 1024))

    kernel = functools.partial(_temporal_attention_kernel,
                               n_scans=S, approx_reciprocal=approx_reciprocal)
    out = pl.pallas_call(
        kernel,
        out_shape=jax.ShapeDtypeStruct((B, nf), jnp.float32),
        grid=(grid,),
        in_specs=[
            pl.BlockSpec((tb, lane_w), lambda i: (i, 0)),   # streamed f32 batch tile
            pl.BlockSpec(w1.shape, lambda i: (0, 0)),       # weights: constant index maps
            pl.BlockSpec(b1.shape, lambda i: (0, 0)),       #  -> VMEM-resident across steps
            pl.BlockSpec(w2p.shape, lambda i: (0, 0, 0)),
            pl.BlockSpec(b2.shape, lambda i: (0, 0)),
            pl.BlockSpec(wf.shape, lambda i: (0, 0)),
            pl.BlockSpec(bf.shape, lambda i: (0, 0)),
        ],
        out_specs=pl.BlockSpec((tb, nf), lambda i: (i, 0)),
        compiler_params=pltpu.CompilerParams(
            dimension_semantics=("parallel",),              # both TCs on v7x, pipelined DMA
            vmem_limit_bytes=vmem_limit),
    )(x_flat, w1, b1, w2p, b2, wf, bf)
    # Ragged last grid block: rows >= B inside the last tile are garbage but row-independent and
    # are dropped by the masked writeback (output array is exactly (B, nf)).
    return out[:, :S]


def init_params(key, n_scans, n_pts, n_channel):
    """Raw parameters mirroring the PyTorch module's init (eval-mode BN buffers)."""
    k = jax.random.split(key, 6)
    gain = (2.0 / (1.0 + NEG_SLOPE ** 2)) ** 0.5  # kaiming gain for leaky_relu(a=0.1)

    fan1 = n_channel * n_pts
    conv1_w = jax.random.normal(k[0], (128, n_channel, n_pts), jnp.float32) * (gain / fan1 ** 0.5)
    conv1_b = jax.random.uniform(k[1], (128,), jnp.float32, -1.0 / fan1 ** 0.5, 1.0 / fan1 ** 0.5)

    fan2 = 128 * n_scans
    conv2_w = jax.random.normal(k[2], (64, 128, n_scans), jnp.float32) * (gain / fan2 ** 0.5)
    conv2_b = jax.random.uniform(k[3], (64,), jnp.float32, -1.0 / fan2 ** 0.5, 1.0 / fan2 ** 0.5)

    fan3 = 64
    fc_w = jax.random.uniform(k[4], (n_scans, 64), jnp.float32, -1.0 / fan3 ** 0.5, 1.0 / fan3 ** 0.5)
    fc_b = jax.random.uniform(k[5], (n_scans,), jnp.float32, -1.0 / fan3 ** 0.5, 1.0 / fan3 ** 0.5)

    return dict(
        conv1_w=conv1_w, conv1_b=conv1_b,
        bn1_gamma=jnp.ones((128,), jnp.float32), bn1_beta=jnp.zeros((128,), jnp.float32),
        bn1_mean=jnp.zeros((128,), jnp.float32), bn1_var=jnp.ones((128,), jnp.float32),
        conv2_w=conv2_w, conv2_b=conv2_b,
        bn2_gamma=jnp.ones((64,), jnp.float32), bn2_beta=jnp.zeros((64,), jnp.float32),
        bn2_mean=jnp.zeros((64,), jnp.float32), bn2_var=jnp.ones((64,), jnp.float32),
        fc_w=fc_w, fc_b=fc_b,
    )


def pack_params(raw, eps=1e-5):
    """Fold eval-mode BN + conv bias into weights; 128-align CP; pair scans for K=256 conv2;
    pad fc to a lane-dense 128-wide output; cast matmul operands to bf16."""
    s1 = raw["bn1_gamma"] / jnp.sqrt(raw["bn1_var"] + eps)
    t1 = raw["bn1_beta"] - raw["bn1_mean"] * s1
    s2 = raw["bn2_gamma"] / jnp.sqrt(raw["bn2_var"] + eps)
    t2 = raw["bn2_beta"] - raw["bn2_mean"] * s2

    n_out1, n_ch, n_pts = raw["conv1_w"].shape
    cp = n_ch * n_pts
    cp_pad = _round_up(cp, 128)                                        # lane-aligned scan slices
    w1 = raw["conv1_w"].reshape(n_out1, cp).T * s1[None, :]            # (CP, 128)
    if cp_pad != cp:
        w1 = jnp.pad(w1, ((0, cp_pad - cp), (0, 0)))
    b1 = (raw["conv1_b"] * s1 + t1).reshape(1, n_out1)

    n_out2, _, n_scans = raw["conv2_w"].shape
    # conv2_w: (64, 128, S) -> w2[s, k, o] = conv2_w[o, k, s] * bn2_scale[o]
    w2 = jnp.transpose(raw["conv2_w"], (2, 1, 0)) * s2[None, None, :]  # (S, 128, 64)
    n_pairs = (n_scans + 1) // 2
    if n_scans % 2:                                                    # zero tail for odd S
        w2 = jnp.concatenate([w2, jnp.zeros((1, n_out1, n_out2), w2.dtype)], axis=0)
    w2p = w2.reshape(n_pairs, 2 * n_out1, n_out2)                      # scan pairs, K=256
    b2 = (raw["conv2_b"] * s2 + t2).reshape(1, n_out2)

    nf = _round_up(n_scans, 128)                                       # lane-dense fc/output
    wf = jnp.pad(raw["fc_w"].T, ((0, 0), (0, nf - n_scans)))           # (64, nf)
    bf = jnp.pad(raw["fc_b"], (0, nf - n_scans),
                 constant_values=_NEG_BIG).reshape(1, nf)              # pad logits -> exp == 0

    return (w1.astype(jnp.bfloat16), b1.astype(jnp.float32),
            w2p.astype(jnp.bfloat16), b2.astype(jnp.float32),
            wf.astype(jnp.bfloat16), bf.astype(jnp.float32))


def reference_forward(x, raw, eps=1e-5):
    """Pure-JAX f32 mirror of the PyTorch eval-mode forward (semantic ground truth)."""
    B, S, C, P = x.shape
    z = x.reshape(B * S, C * P) @ raw["conv1_w"].reshape(128, C * P).T + raw["conv1_b"]
    z = (z - raw["bn1_mean"]) * raw["bn1_gamma"] / jnp.sqrt(raw["bn1_var"] + eps) + raw["bn1_beta"]
    z = _leaky(z).reshape(B, S, 128)
    h = jnp.einsum("bsk,oks->bo", z, raw["conv2_w"]) + raw["conv2_b"]
    h = (h - raw["bn2_mean"]) * raw["bn2_gamma"] / jnp.sqrt(raw["bn2_var"] + eps) + raw["bn2_beta"]
    h = _leaky(h)
    logits = h @ raw["fc_w"].T + raw["fc_b"]
    return jax.nn.softmax(logits, axis=1)


def reference_forward_packed(x, packed):
    """Pure-JAX reference matching the kernel numerics (bf16 operands, f32 accumulation)."""
    B, S, C, P = x.shape
    w1, b1, w2p, b2, wf, bf = packed
    cp = C * P
    cp_pad = w1.shape[0]
    xs = x.reshape(B, S, cp)
    if cp_pad != cp:
        xs = jnp.pad(xs, ((0, 0), (0, 0), (0, cp_pad - cp)))
    xs = xs.astype(jnp.bfloat16)
    a = jnp.einsum("bsc,ck->bsk", xs, w1, preferred_element_type=jnp.float32) + b1
    a = _leaky(a).astype(jnp.bfloat16)
    n_pairs = w2p.shape[0]
    if 2 * n_pairs != S:
        a = jnp.concatenate([a, jnp.zeros((B, 1, a.shape[-1]), jnp.bfloat16)], axis=1)
    ap = a.reshape(B, n_pairs, 2 * a.shape[-1])
    h = jnp.einsum("bpk,pko->bo", ap, w2p, preferred_element_type=jnp.float32) + b2
    h = _leaky(h)
    logits = jnp.dot(h.astype(jnp.bfloat16), wf, preferred_element_type=jnp.float32) + bf
    return jax.nn.softmax(logits, axis=-1)[:, :S]


if __name__ == "__main__":
    # Small shapes: B=50 with the tb-picker gives a 2-step grid plus a ragged last block.
    B, n_scans, n_channel, n_pts = 50, 8, 4, 32

    key = jax.random.PRNGKey(0)
    kx, kp = jax.random.split(key)
    x = jax.random.normal(kx, (B, n_scans, n_channel, n_pts), jnp.float32)
    raw = init_params(kp, n_scans, n_pts, n_channel)
    packed = pack_params(raw)

    fwd = jax.jit(functools.partial(temporal_attention_forward, block_b=1024))
    out = jax.block_until_ready(fwd(x, packed))

    assert out.shape == (B, n_scans)
    # Softmax rows must sum to 1 (approx reciprocal -> loose tolerance; documented choice).
    assert jnp.allclose(jnp.sum(out, axis=1), 1.0, atol=1e-2)
    # Strict check vs a reference with identical bf16/f32 numerics (validates kernel wiring).
    ref_matched = reference_forward_packed(x, packed)
    assert jnp.allclose(out, ref_matched, atol=5e-3, rtol=5e-3), \
        float(jnp.max(jnp.abs(out - ref_matched)))
    # Looser check vs the full-f32 PyTorch-equivalent forward (bf16 quantization tolerance).
    ref_f32 = reference_forward(x, raw)
    assert jnp.allclose(out, ref_f32, atol=5e-2, rtol=5e-2), \
        float(jnp.max(jnp.abs(out - ref_f32)))

    print("KERNEL_OK")
</pallas_src>

<mosaic_0001>
module attributes {stable_mosaic.version = 11 : i64} {
  func.func @_temporal_attention_kernel(%arg0: i32, %arg1: memref<32x1024xf32, #tpu.memory_space<vmem>>, %arg2: memref<128x128xbf16, #tpu.memory_space<vmem>>, %arg3: memref<1x128xf32, #tpu.memory_space<vmem>>, %arg4: memref<4x256x64xbf16, #tpu.memory_space<vmem>>, %arg5: memref<1x64xf32, #tpu.memory_space<vmem>>, %arg6: memref<64x128xbf16, #tpu.memory_space<vmem>>, %arg7: memref<1x128xf32, #tpu.memory_space<vmem>>, %arg8: memref<32x128xf32, #tpu.memory_space<vmem>>) attributes {dimension_semantics = [#tpu.dimension_semantics<parallel>], iteration_bounds = array<i64: 2>, scalar_prefetch = 0 : i64, scratch_operands = 0 : i64, tpu.core_type = #tpu.core_type<tc>, window_params = [{transform_indices = @transform_0, window_bounds = array<i64: 32, 1024>}, {pipeline_mode = #tpu.pipeline_mode<synchronous>, transform_indices = @transform_1, window_bounds = array<i64: 128, 128>}, {pipeline_mode = #tpu.pipeline_mode<synchronous>, transform_indices = @transform_2, window_bounds = array<i64: 1, 128>}, {pipeline_mode = #tpu.pipeline_mode<synchronous>, transform_indices = @transform_3, window_bounds = array<i64: 4, 256, 64>}, {pipeline_mode = #tpu.pipeline_mode<synchronous>, transform_indices = @transform_4, window_bounds = array<i64: 1, 64>}, {pipeline_mode = #tpu.pipeline_mode<synchronous>, transform_indices = @transform_5, window_bounds = array<i64: 64, 128>}, {pipeline_mode = #tpu.pipeline_mode<synchronous>, transform_indices = @transform_6, window_bounds = array<i64: 1, 128>}, {transform_indices = @transform_7, window_bounds = array<i64: 32, 128>}]} {
    %c0 = arith.constant 0 : index
    %c0_0 = arith.constant 0 : index
    %0 = vector.load %arg2[%c0, %c0_0] : memref<128x128xbf16, #tpu.memory_space<vmem>>, vector<128x128xbf16>
    %c0_1 = arith.constant 0 : index
    %c0_2 = arith.constant 0 : index
    %1 = vector.load %arg3[%c0_1, %c0_2] : memref<1x128xf32, #tpu.memory_space<vmem>>, vector<1x128xf32>
    %2 = vector.shape_cast %1 : vector<1x128xf32> to vector<1x128xf32>
    %3 = vector.broadcast %2 : vector<1x128xf32> to vector<32x128xf32>
    %cst = arith.constant 0.000000e+00 : f32
    %4 = vector.broadcast %cst : f32 to vector<32x64xf32>
    %c0_3 = arith.constant 0 : index
    %c0_4 = arith.constant 0 : index
    %5 = vector.load %arg1[%c0_3, %c0_4] : memref<32x1024xf32, #tpu.memory_space<vmem>>, vector<32x128xf32>
    %6 = arith.truncf %5 : vector<32x128xf32> to vector<32x128xbf16>
    %cst_5 = arith.constant dense<0.000000e+00> : vector<32x128xf32>
    %7 = tpu.matmul %6, %0, %cst_5 {dimension_numbers = #tpu.dot_dimension_numbers<[1], [0], [0], [1], [0, 0, 1, 1], [], []>} : vector<32x128xbf16>, vector<128x128xbf16>, vector<32x128xf32> -> vector<32x128xf32>
    %8 = arith.addf %7, %3 : vector<32x128xf32>
    %cst_6 = arith.constant 1.000000e-01 : f32
    %9 = vector.broadcast %cst_6 : f32 to vector<32x128xf32>
    %10 = arith.mulf %9, %8 : vector<32x128xf32>
    %11 = arith.maximumf %8, %10 : vector<32x128xf32>
    %12 = arith.truncf %11 : vector<32x128xf32> to vector<32x128xbf16>
    %c0_7 = arith.constant 0 : index
    %c128 = arith.constant 128 : index
    %13 = vector.load %arg1[%c0_7, %c128] : memref<32x1024xf32, #tpu.memory_space<vmem>>, vector<32x128xf32>
    %14 = arith.truncf %13 : vector<32x128xf32> to vector<32x128xbf16>
    %cst_8 = arith.constant dense<0.000000e+00> : vector<32x128xf32>
    %15 = tpu.matmul %14, %0, %cst_8 {dimension_numbers = #tpu.dot_dimension_numbers<[1], [0], [0], [1], [0, 0, 1, 1], [], []>} : vector<32x128xbf16>, vector<128x128xbf16>, vector<32x128xf32> -> vector<32x128xf32>
    %16 = arith.addf %15, %3 : vector<32x128xf32>
    %cst_9 = arith.constant 1.000000e-01 : f32
    %17 = vector.broadcast %cst_9 : f32 to vector<32x128xf32>
    %18 = arith.mulf %17, %16 : vector<32x128xf32>
    %19 = arith.maximumf %16, %18 : vector<32x128xf32>
    %20 = arith.truncf %19 : vector<32x128xf32> to vector<32x128xbf16>
    %21 = tpu.concatenate %12, %20 in 1 : vector<32x128xbf16>, vector<32x128xbf16> -> vector<32x256xbf16>
    %c0_10 = arith.constant 0 : index
    %c0_11 = arith.constant 0 : index
    %c0_12 = arith.constant 0 : index
    %22 = vector.load %arg4[%c0_10, %c0_11, %c0_12] : memref<4x256x64xbf16, #tpu.memory_space<vmem>>, vector<1x256x64xbf16>
    %23 = vector.shape_cast %22 : vector<1x256x64xbf16> to vector<256x64xbf16>
    %cst_13 = arith.constant dense<0.000000e+00> : vector<32x64xf32>
    %24 = tpu.matmul %21, %23, %cst_13 {dimension_numbers = #tpu.dot_dimension_numbers<[1], [0], [0], [1], [0, 0, 1, 1], [], []>} : vector<32x256xbf16>, vector<256x64xbf16>, vector<32x64xf32> -> vector<32x64xf32>
    %25 = arith.addf %4, %24 : vector<32x64xf32>
    %c0_14 = arith.constant 0 : index
    %c256 = arith.constant 256 : index
    %26 = vector.load %arg1[%c0_14, %c256] : memref<32x1024xf32, #tpu.memory_space<vmem>>, vector<32x128xf32>
    %27 = arith.truncf %26 : vector<32x128xf32> to vector<32x128xbf16>
    %cst_15 = arith.constant dense<0.000000e+00> : vector<32x128xf32>
    %28 = tpu.matmul %27, %0, %cst_15 {dimension_numbers = #tpu.dot_dimension_numbers<[1], [0], [0], [1], [0, 0, 1, 1], [], []>} : vector<32x128xbf16>, vector<128x128xbf16>, vector<32x128xf32> -> vector<32x128xf32>
    %29 = arith.addf %28, %3 : vector<32x128xf32>
    %cst_16 = arith.constant 1.000000e-01 : f32
    %30 = vector.broadcast %cst_16 : f32 to vector<32x128xf32>
    %31 = arith.mulf %30, %29 : vector<32x128xf32>
    %32 = arith.maximumf %29, %31 : vector<32x128xf32>
    %33 = arith.truncf %32 : vector<32x128xf32> to vector<32x128xbf16>
    %c0_17 = arith.constant 0 : index
    %c384 = arith.constant 384 : index
    %34 = vector.load %arg1[%c0_17, %c384] : memref<32x1024xf32, #tpu.memory_space<vmem>>, vector<32x128xf32>
    %35 = arith.truncf %34 : vector<32x128xf32> to vector<32x128xbf16>
    %cst_18 = arith.constant dense<0.000000e+00> : vector<32x128xf32>
    %36 = tpu.matmul %35, %0, %cst_18 {dimension_numbers = #tpu.dot_dimension_numbers<[1], [0], [0], [1], [0, 0, 1, 1], [], []>} : vector<32x128xbf16>, vector<128x128xbf16>, vector<32x128xf32> -> vector<32x128xf32>
    %37 = arith.addf %36, %3 : vector<32x128xf32>
    %cst_19 = arith.constant 1.000000e-01 : f32
    %38 = vector.broadcast %cst_19 : f32 to vector<32x128xf32>
    %39 = arith.mulf %38, %37 : vector<32x128xf32>
    %40 = arith.maximumf %37, %39 : vector<32x128xf32>
    %41 = arith.truncf %40 : vector<32x128xf32> to vector<32x128xbf16>
    %42 = tpu.concatenate %33, %41 in 1 : vector<32x128xbf16>, vector<32x128xbf16> -> vector<32x256xbf16>
    %c1 = arith.constant 1 : index
    %c0_20 = arith.constant 0 : index
    %c0_21 = arith.constant 0 : index
    %43 = vector.load %arg4[%c1, %c0_20, %c0_21] : memref<4x256x64xbf16, #tpu.memory_space<vmem>>, vector<1x256x64xbf16>
    %44 = vector.shape_cast %43 : vector<1x256x64xbf16> to vector<256x64xbf16>
    %cst_22 = arith.constant dense<0.000000e+00> : vector<32x64xf32>
    %45 = tpu.matmul %42, %44, %cst_22 {dimension_numbers = #tpu.dot_dimension_numbers<[1], [0], [0], [1], [0, 0, 1, 1], [], []>} : vector<32x256xbf16>, vector<256x64xbf16>, vector<32x64xf32> -> vector<32x64xf32>
    %46 = arith.addf %25, %45 : vector<32x64xf32>
    %c0_23 = arith.constant 0 : index
    %c512 = arith.constant 512 : index
    %47 = vector.load %arg1[%c0_23, %c512] : memref<32x1024xf32, #tpu.memory_space<vmem>>, vector<32x128xf32>
    %48 = arith.truncf %47 : vector<32x128xf32> to vector<32x128xbf16>
    %cst_24 = arith.constant dense<0.000000e+00> : vector<32x128xf32>
    %49 = tpu.matmul %48, %0, %cst_24 {dimension_numbers = #tpu.dot_dimension_numbers<[1], [0], [0], [1], [0, 0, 1, 1], [], []>} : vector<32x128xbf16>, vector<128x128xbf16>, vector<32x128xf32> -> vector<32x128xf32>
    %50 = arith.addf %49, %3 : vector<32x128xf32>
    %cst_25 = arith.constant 1.000000e-01 : f32
    %51 = vector.broadcast %cst_25 : f32 to vector<32x128xf32>
    %52 = arith.mulf %51, %50 : vector<32x128xf32>
    %53 = arith.maximumf %50, %52 : vector<32x128xf32>
    %54 = arith.truncf %53 : vector<32x128xf32> to vector<32x128xbf16>
    %c0_26 = arith.constant 0 : index
    %c640 = arith.constant 640 : index
    %55 = vector.load %arg1[%c0_26, %c640] : memref<32x1024xf32, #tpu.memory_space<vmem>>, vector<32x128xf32>
    %56 = arith.truncf %55 : vector<32x128xf32> to vector<32x128xbf16>
    %cst_27 = arith.constant dense<0.000000e+00> : vector<32x128xf32>
    %57 = tpu.matmul %56, %0, %cst_27 {dimension_numbers = #tpu.dot_dimension_numbers<[1], [0], [0], [1], [0, 0, 1, 1], [], []>} : vector<32x128xbf16>, vector<128x128xbf16>, vector<32x128xf32> -> vector<32x128xf32>
    %58 = arith.addf %57, %3 : vector<32x128xf32>
    %cst_28 = arith.constant 1.000000e-01 : f32
    %59 = vector.broadcast %cst_28 : f32 to vector<32x128xf32>
    %60 = arith.mulf %59, %58 : vector<32x128xf32>
    %61 = arith.maximumf %58, %60 : vector<32x128xf32>
    %62 = arith.truncf %61 : vector<32x128xf32> to vector<32x128xbf16>
    %63 = tpu.concatenate %54, %62 in 1 : vector<32x128xbf16>, vector<32x128xbf16> -> vector<32x256xbf16>
    %c2 = arith.constant 2 : index
    %c0_29 = arith.constant 0 : index
    %c0_30 = arith.constant 0 : index
    %64 = vector.load %arg4[%c2, %c0_29, %c0_30] : memref<4x256x64xbf16, #tpu.memory_space<vmem>>, vector<1x256x64xbf16>
    %65 = vector.shape_cast %64 : vector<1x256x64xbf16> to vector<256x64xbf16>
    %cst_31 = arith.constant dense<0.000000e+00> : vector<32x64xf32>
    %66 = tpu.matmul %63, %65, %cst_31 {dimension_numbers = #tpu.dot_dimension_numbers<[1], [0], [0], [1], [0, 0, 1, 1], [], []>} : vector<32x256xbf16>, vector<256x64xbf16>, vector<32x64xf32> -> vector<32x64xf32>
    %67 = arith.addf %46, %66 : vector<32x64xf32>
    %c0_32 = arith.constant 0 : index
    %c768 = arith.constant 768 : index
    %68 = vector.load %arg1[%c0_32, %c768] : memref<32x1024xf32, #tpu.memory_space<vmem>>, vector<32x128xf32>
    %69 = arith.truncf %68 : vector<32x128xf32> to vector<32x128xbf16>
    %cst_33 = arith.constant dense<0.000000e+00> : vector<32x128xf32>
    %70 = tpu.matmul %69, %0, %cst_33 {dimension_numbers = #tpu.dot_dimension_numbers<[1], [0], [0], [1], [0, 0, 1, 1], [], []>} : vector<32x128xbf16>, vector<128x128xbf16>, vector<32x128xf32> -> vector<32x128xf32>
    %71 = arith.addf %70, %3 : vector<32x128xf32>
    %cst_34 = arith.constant 1.000000e-01 : f32
    %72 = vector.broadcast %cst_34 : f32 to vector<32x128xf32>
    %73 = arith.mulf %72, %71 : vector<32x128xf32>
    %74 = arith.maximumf %71, %73 : vector<32x128xf32>
    %75 = arith.truncf %74 : vector<32x128xf32> to vector<32x128xbf16>
    %c0_35 = arith.constant 0 : index
    %c896 = arith.constant 896 : index
    %76 = vector.load %arg1[%c0_35, %c896] : memref<32x1024xf32, #tpu.memory_space<vmem>>, vector<32x128xf32>
    %77 = arith.truncf %76 : vector<32x128xf32> to vector<32x128xbf16>
    %cst_36 = arith.constant dense<0.000000e+00> : vector<32x128xf32>
    %78 = tpu.matmul %77, %0, %cst_36 {dimension_numbers = #tpu.dot_dimension_numbers<[1], [0], [0], [1], [0, 0, 1, 1], [], []>} : vector<32x128xbf16>, vector<128x128xbf16>, vector<32x128xf32> -> vector<32x128xf32>
    %79 = arith.addf %78, %3 : vector<32x128xf32>
    %cst_37 = arith.constant 1.000000e-01 : f32
    %80 = vector.broadcast %cst_37 : f32 to vector<32x128xf32>
    %81 = arith.mulf %80, %79 : vector<32x128xf32>
    %82 = arith.maximumf %79, %81 : vector<32x128xf32>
    %83 = arith.truncf %82 : vector<32x128xf32> to vector<32x128xbf16>
    %84 = tpu.concatenate %75, %83 in 1 : vector<32x128xbf16>, vector<32x128xbf16> -> vector<32x256xbf16>
    %c3 = arith.constant 3 : index
    %c0_38 = arith.constant 0 : index
    %c0_39 = arith.constant 0 : index
    %85 = vector.load %arg4[%c3, %c0_38, %c0_39] : memref<4x256x64xbf16, #tpu.memory_space<vmem>>, vector<1x256x64xbf16>
    %86 = vector.shape_cast %85 : vector<1x256x64xbf16> to vector<256x64xbf16>
    %cst_40 = arith.constant dense<0.000000e+00> : vector<32x64xf32>
    %87 = tpu.matmul %84, %86, %cst_40 {dimension_numbers = #tpu.dot_dimension_numbers<[1], [0], [0], [1], [0, 0, 1, 1], [], []>} : vector<32x256xbf16>, vector<256x64xbf16>, vector<32x64xf32> -> vector<32x64xf32>
    %88 = arith.addf %67, %87 : vector<32x64xf32>
    %c0_41 = arith.constant 0 : index
    %c0_42 = arith.constant 0 : index
    %89 = vector.load %arg5[%c0_41, %c0_42] : memref<1x64xf32, #tpu.memory_space<vmem>>, vector<1x64xf32>
    %90 = vector.broadcast %89 : vector<1x64xf32> to vector<32x64xf32>
    %91 = arith.addf %88, %90 : vector<32x64xf32>
    %cst_43 = arith.constant 1.000000e-01 : f32
    %92 = vector.broadcast %cst_43 : f32 to vector<32x64xf32>
    %93 = arith.mulf %92, %91 : vector<32x64xf32>
    %94 = arith.maximumf %91, %93 : vector<32x64xf32>
    %95 = arith.truncf %94 : vector<32x64xf32> to vector<32x64xbf16>
    %c0_44 = arith.constant 0 : index
    %c0_45 = arith.constant 0 : index
    %96 = vector.load %arg6[%c0_44, %c0_45] : memref<64x128xbf16, #tpu.memory_space<vmem>>, vector<64x128xbf16>
    %cst_46 = arith.constant dense<0.000000e+00> : vector<32x128xf32>
    %97 = tpu.matmul %95, %96, %cst_46 {dimension_numbers = #tpu.dot_dimension_numbers<[1], [0], [0], [1], [0, 0, 1, 1], [], []>} : vector<32x64xbf16>, vector<64x128xbf16>, vector<32x128xf32> -> vector<32x128xf32>
    %c0_47 = arith.constant 0 : index
    %c0_48 = arith.constant 0 : index
    %98 = vector.load %arg7[%c0_47, %c0_48] : memref<1x128xf32, #tpu.memory_space<vmem>>, vector<1x128xf32>
    %99 = vector.broadcast %98 : vector<1x128xf32> to vector<32x128xf32>
    %100 = arith.addf %97, %99 : vector<32x128xf32>
    %cst_49 = arith.constant dense<0xFF800000> : vector<32xf32>
    %101 = vector.multi_reduction <maximumf>, %100, %cst_49 [1] : vector<32x128xf32> to vector<32xf32>
    %102 = vector.shape_cast %101 : vector<32xf32> to vector<32x1xf32>
    %103 = vector.broadcast %102 : vector<32x1xf32> to vector<32x128xf32>
    %104 = arith.subf %100, %103 : vector<32x128xf32>
    %105 = math.exp %104 : vector<32x128xf32>
    %cst_50 = arith.constant dense<0.000000e+00> : vector<32xf32>
    %106 = vector.multi_reduction <add>, %105, %cst_50 [1] : vector<32x128xf32> to vector<32xf32>
    %107 = vector.shape_cast %106 : vector<32xf32> to vector<32x1xf32>
    %108 = tpu.reciprocal %107 {approx = true} : vector<32x1xf32> -> vector<32x1xf32>
    %109 = vector.broadcast %108 : vector<32x1xf32> to vector<32x128xf32>
    %110 = arith.mulf %105, %109 : vector<32x128xf32>
    %c0_51 = arith.constant 0 : index
    %c0_52 = arith.constant 0 : index
    %111 = vector.load %arg8[%c0_51, %c0_52] : memref<32x128xf32, #tpu.memory_space<vmem>>, vector<32x128xf32>
    tpu.vector_store %arg8[%c0_51, %c0_52], %110 {strides = array<i32>} : memref<32x128xf32, #tpu.memory_space<vmem>>, vector<32x128xf32>,
    return
  }
  func.func @transform_0(%arg0: i32) -> (i32, i32) {
    %c0_i32 = arith.constant 0 : i32
    %c0_i32_0 = arith.constant 0 : i32
    return %arg0, %c0_i32 : i32, i32
  }
  func.func @transform_1(%arg0: i32) -> (i32, i32) {
    %c0_i32 = arith.constant 0 : i32
    %c0_i32_0 = arith.constant 0 : i32
    %c0_i32_1 = arith.constant 0 : i32
    return %c0_i32, %c0_i32_0 : i32, i32
  }
  func.func @transform_2(%arg0: i32) -> (i32, i32) {
    %c0_i32 = arith.constant 0 : i32
    %c0_i32_0 = arith.constant 0 : i32
    %c0_i32_1 = arith.constant 0 : i32
    return %c0_i32, %c0_i32_0 : i32, i32
  }
  func.func @transform_3(%arg0: i32) -> (i32, i32, i32) {
    %c0_i32 = arith.constant 0 : i32
    %c0_i32_0 = arith.constant 0 : i32
    %c0_i32_1 = arith.constant 0 : i32
    %c0_i32_2 = arith.constant 0 : i32
    return %c0_i32, %c0_i32_0, %c0_i32_1 : i32, i32, i32
  }
  func.func @transform_4(%arg0: i32) -> (i32, i32) {
    %c0_i32 = arith.constant 0 : i32
    %c0_i32_0 = arith.constant 0 : i32
    %c0_i32_1 = arith.constant 0 : i32
    return %c0_i32, %c0_i32_0 : i32, i32
  }
  func.func @transform_5(%arg0: i32) -> (i32, i32) {
    %c0_i32 = arith.constant 0 : i32
    %c0_i32_0 = arith.constant 0 : i32
    %c0_i32_1 = arith.constant 0 : i32
    return %c0_i32, %c0_i32_0 : i32, i32
  }
  func.func @transform_6(%arg0: i32) -> (i32, i32) {
    %c0_i32 = arith.constant 0 : i32
    %c0_i32_0 = arith.constant 0 : i32
    %c0_i32_1 = arith.constant 0 : i32
    return %c0_i32, %c0_i32_0 : i32, i32
  }
  func.func @transform_7(%arg0: i32) -> (i32, i32) {
    %c0_i32 = arith.constant 0 : i32
    %c0_i32_0 = arith.constant 0 : i32
    return %arg0, %c0_i32 : i32, i32
  }
}

</mosaic_0001>

<bundles_post_ra>
// kernel: temporal_attention_forward.1
= control target key start
LH: loop header
LB: loop body
LE: loop exit
PB: predicated region body
PF: predicated region fallthrough
CT: control target
= control target key end

     0   :  { %s2895_s24 = smov 0   ;;  %s2897_s25 = smov 0   ;;  %s3477_s0 = inlined_call_operand.vmem [shape: f32[50,1024], index: 0, kind: input, shape index: {}]   ;;  %s3478_s1 = inlined_call_operand.vmem [shape: bf16[128,128], index: 1, kind: input, shape index: {}]   ;;  %s3479_s2 = inlined_call_operand.vmem [shape: f32[1,128], index: 2, kind: input, shape index: {}]   ;;  %s3480_s3 = inlined_call_operand.vmem [shape: bf16[4,256,64], index: 3, kind: input, shape index: {}]   ;;  %s3481_s4 = inlined_call_operand.vmem [shape: f32[1,64], index: 4, kind: input, shape index: {}]   ;;  %s3482_s5 = inlined_call_operand.vmem [shape: bf16[64,128], index: 5, kind: input, shape index: {}]   ;;  %s3483_s6 = inlined_call_operand.vmem [shape: f32[1,128], index: 6, kind: input, shape index: {}]   ;;  %s3484_s7 = inlined_call_operand.vmem [shape: f32[50,128], index: 7, kind: output, shape index: {}]  }
   0x1   :  { %s2899_s26 = smov 0  }
   0x2 LB: > { %s2908_s27 = sadd.s32 4294967295, %s2821_s26   ;;  %s2910_s28 = sadd.s32 1, %s2821_s26   ;;  %s2821_s26 = sphi %s2899_s26, %s3491_s26   ;;  %s2817_s25 = sphi %s2897_s25, %s3490_s25   ;;  %s2813_s24 = sphi %s2895_s24, %s3489_s24  }
   0x3   : > { %s173_s29 = ssub.s32 %s2821_s26, %s2910_s28  ;;  %s176_s30 = sadd.s32 1, %s2817_s25 }
   0x4   : > { %p174_p0 = scmp.eq.s32.totalorder %s173_s29, 0  ;;  %p186_p1 = scmp.ne.s32.totalorder %s2817_s25, %s2813_s24 }
   0x5   : > { %p187_p2 = scmp.eq.s32.totalorder %s2908_s27, 1  ;;  %p2006_p3 = scmp.ge.s32.totalorder %s2821_s26, 1 }
   0x6   : > { %s2918_s8 = scalar_select %p174_p0, %s2817_s25, %s176_s30  }
   0x7   : > { %p2920_p4 = por %p187_p2, %p186_p1  ;;  %p249_p5 = scmp.lt.s32.totalorder %s2821_s26, 3 }
   0x9   : > { %p250_p6 = pnand %p2006_p3, %p249_p5 }
   0xa   : > { %s2930_s12 = sshll.u32 (!%p250_p6), %s2908_s27, 2  ;;  %s283_s22 = sand.u32 (!%p250_p6), 1, %s2813_s24  }
   0xb   : > { %253 = sbr.rel (%p250_p6) target bundleno = 1542 (0x606), region = 48  ;;  %p292_p7 = scmp.lt.s32.totalorder (!%p250_p6), %s2930_s12, 6 }
   0xc   : > { %s2007_s23 = sshll.u32 (!%p250_p6), %s283_s22, 5 }
   0xd   : > { %s3415_s26 = scalar_lea.vmem (!%p250_p6), [#allocation2], %s2007_s23  }
  0x10   : > { %v2927_v0 = vld [vmem:[%s3478_s1 + $0x38] sm:$0xff]   ;;  %v2935_v1 = vld [vmem:[%s3478_s1 + $0x30] sm:$0xff]   ;;  %s293_s15 = scalar_select %p292_p7, %s2930_s12, 6  ;;  %v2948_v2 = vld [vmem:[%s3478_s1 + $0x28] sm:$0xff]   ;;  %vm1679_vm0 = vcmask 523264  }
  0x11   : > { %2407 = vmatprep.subr.bf16.mxu0 %v2927_v0  ;;  %2427 = vmatprep.subr.bf16.mxu1 %v2927_v0  ;;  %v2960_v3 = vld [vmem:[%s3478_s1 + $0x20] sm:$0xff]   ;;  %v2975_v10 = vld [vmem:[%s3478_s1 + $0x18] sm:$0xff]   ;;  %v2984_v11 = vld [vmem:[%s3478_s1 + $0x10] sm:$0xff]   ;;  %s1783_s24 = ssub.s32 (%p2920_p4), 7, %s2930_s12  ;;  %s2206_s29 = sshll.u32 (%p2920_p4), %s2908_s27, 5 }
  0x12   : > { %2408 = vmatpush3.bf16.msra.mxu0 %v2927_v0  ;;  %2428 = vmatpush3.bf16.msra.mxu1 %v2927_v0  ;;  %s2205_s18 = sshll.u32 %s293_s15, 6  ;;  %v2993_v12 = vld [vmem:[%s3478_s1 + $0x8] sm:$0xff]   ;;  %v2998_v13 = vld [vmem:[%s3478_s1] sm:$0xff]   ;;  %v2675_v30 = vld [vmem:[%s3480_s3 + $0x78] sm:$0xff]   ;;  %p1784_p8 = scmp.lt.s32.totalorder (%p2920_p4), %s1783_s24, 4 }
  0x13   : > { %2409 = vmatprep.subr.bf16.mxu0 %v2935_v1  ;;  %2429 = vmatprep.subr.bf16.mxu1 %v2935_v1  ;;  %s2953_s21 = scalar_lea.vmem %s3477_s0, %s2205_s18  ;;  %v2676_v33 = vld [vmem:[%s3480_s3 + $0x38] sm:$0xff]   ;;  %v2677_v34 = vld [vmem:[%s3480_s3 + $0x70] sm:$0xff]   ;;  %v2679_v36 = vld [vmem:[%s3480_s3 + $0x68] sm:$0xff]   ;;  %s3428_s11 = scalar_lea.vmem (%p2920_p4), %s3484_s7, %s2206_s29  }
  0x14   : > { %v332_v4 = vld [vmem:[%s2953_s21] sm:$0xff]  ;;  %v445_v6 = vld [vmem:[%s2953_s21 + $0x8] sm:$0xff]  ;;  %v542_v18 = vld [vmem:[%s2953_s21 + $0x10] sm:$0xff] }
  0x15   : > { %v333_v5 = vld [vmem:[%s2953_s21 + $0x40] sm:$0xff]  ;;  %v446_v8 = vld [vmem:[%s2953_s21 + $0x48] sm:$0xff]  ;;  %v543_v19 = vld [vmem:[%s2953_s21 + $0x50] sm:$0xff] }
  0x16   : > { %2410 = vmatpush3.bf16.msra.mxu0 %v2935_v1  ;;  %2430 = vmatpush3.bf16.msra.mxu1 %v2935_v1  ;;  %v336_v7 = vpack.c.bf16 %v333_v5, %v332_v4  ;;  %v449_v9 = vpack.c.bf16 %v446_v8, %v445_v6  ;;  %v334_v14 = vld [vmem:[%s2953_s21 + $0x80] sm:$0xff]  ;;  %v447_v16 = vld [vmem:[%s2953_s21 + $0x88] sm:$0xff]  ;;  %v607_v20 = vld [vmem:[%s2953_s21 + $0x18] sm:$0xff]  ;;  %v546_v24 = vpack.c.bf16 %v543_v19, %v542_v18 }
  0x17   : > { %2411 = vmatprep.subr.bf16.mxu0 %v2948_v2  ;;  %2431 = vmatprep.subr.bf16.mxu1 %v2948_v2  ;;  %v335_v15 = vld [vmem:[%s2953_s21 + $0xc0] sm:$0xff]  ;;  %v448_v17 = vld [vmem:[%s2953_s21 + $0xc8] sm:$0xff]  ;;  %v608_v21 = vld [vmem:[%s2953_s21 + $0x58] sm:$0xff] }
  0x18   : > { %2423 = vmatprep.mubr.bf16.mxu0 %v336_v7  ;;  %2443 = vmatprep.mubr.bf16.mxu1 %v449_v9  ;;  %v337_v22 = vpack.c.bf16 %v335_v15, %v334_v14  ;;  %v450_v23 = vpack.c.bf16 %v448_v17, %v447_v16  ;;  %v611_v25 = vpack.c.bf16 %v608_v21, %v607_v20  ;;  %v544_v26 = vld [vmem:[%s2953_s21 + $0x90] sm:$0xff]  ;;  %v609_v28 = vld [vmem:[%s2953_s21 + $0x98] sm:$0xff]  ;;  %v2680_v37 = vld [vmem:[%s3480_s3 + $0x28] sm:$0xff]  }
  0x19   : > { %v545_v27 = vld [vmem:[%s2953_s21 + $0xd0] sm:$0xff]  ;;  %v610_v29 = vld [vmem:[%s2953_s21 + $0xd8] sm:$0xff]  ;;  %v2681_v38 = vld [vmem:[%s3480_s3 + $0x60] sm:$0xff]  }
  0x1a   : > { %2412 = vmatpush3.bf16.msra.mxu0 %v2948_v2  ;;  %2432 = vmatpush3.bf16.msra.mxu1 %v2948_v2  ;;  %v547_v31 = vpack.c.bf16 %v545_v27, %v544_v26  ;;  %v612_v32 = vpack.c.bf16 %v610_v29, %v609_v28  ;;  %v2678_v35 = vld [vmem:[%s3480_s3 + $0x30] sm:$0xff]   ;;  %v2682_v39 = vld [vmem:[%s3480_s3 + $0x20] sm:$0xff]   ;;  %v2683_v40 = vld [vmem:[%s3480_s3 + $0x58] sm:$0xff]  }
  0x1b   : > { %2413 = vmatprep.subr.bf16.mxu0 %v2960_v3  ;;  %2433 = vmatprep.subr.bf16.mxu1 %v2960_v3  ;;  %v2684_v41 = vld [vmem:[%s3480_s3 + $0x18] sm:$0xff]   ;;  %v2685_v42 = vld [vmem:[%s3480_s3 + $0x50] sm:$0xff]   ;;  %v2687_v44 = vld [vmem:[%s3480_s3 + $0x48] sm:$0xff]  }
  0x1c   : > { %v2686_v43 = vld [vmem:[%s3480_s3 + $0x10] sm:$0xff]   ;;  %v2688_v45 = vld [vmem:[%s3480_s3 + $0x8] sm:$0xff]   ;;  %v2689_v46 = vld [vmem:[%s3480_s3 + $0x40] sm:$0xff]  }
  0x1d   : > { %v2690_v47 = vld [vmem:[%s3480_s3] sm:$0xff]   ;;  %v2691_v48 = vld [vmem:[%s3480_s3 + $0xf8] sm:$0xff]   ;;  %v2693_v50 = vld [vmem:[%s3480_s3 + $0xf0] sm:$0xff]  }
  0x1e   : > { %2414 = vmatpush3.bf16.msra.mxu0 %v2960_v3  ;;  %2434 = vmatpush3.bf16.msra.mxu1 %v2960_v3  ;;  %v2692_v49 = vld [vmem:[%s3480_s3 + $0xb8] sm:$0xff]   ;;  %v2694_v51 = vld [vmem:[%s3480_s3 + $0xb0] sm:$0xff]   ;;  %v2695_v52 = vld [vmem:[%s3480_s3 + $0xe8] sm:$0xff]  }
  0x1f   : > { %2415 = vmatprep.subr.bf16.mxu0 %v2975_v10  ;;  %2435 = vmatprep.subr.bf16.mxu1 %v2975_v10  ;;  %v2696_v53 = vld [vmem:[%s3480_s3 + $0xa8] sm:$0xff]   ;;  %v2697_v54 = vld [vmem:[%s3480_s3 + $0xe0] sm:$0xff]   ;;  %v2699_v56 = vld [vmem:[%s3480_s3 + $0xd8] sm:$0xff]  }
  0x20   : > { %v2698_v55 = vld [vmem:[%s3480_s3 + $0xa0] sm:$0xff]   ;;  %v2700_v57 = vld [vmem:[%s3480_s3 + $0x98] sm:$0xff]   ;;  %v2701_v58 = vld [vmem:[%s3480_s3 + $0xd0] sm:$0xff]  }
  0x21   : > { %v2702_v59 = vld [vmem:[%s3480_s3 + $0x90] sm:$0xff]   ;;  %v2703_v60 = vld [vmem:[%s3480_s3 + $0xc8] sm:$0xff]   ;;  %v2705_v62 = vld [vmem:[%s3480_s3 + $0xc0] sm:$0xff]  }
  0x22   : > { %2416 = vmatpush3.bf16.msra.mxu0 %v2975_v10  ;;  %2436 = vmatpush3.bf16.msra.mxu1 %v2975_v10  ;;  %v2704_v61 = vld [vmem:[%s3480_s3 + $0x88] sm:$0xff]   ;;  %v2706_v63 = vld [vmem:[%s3480_s3 + $0x80] sm:$0xff]  }
  0x23   : > { %2417 = vmatprep.subr.bf16.mxu0 %v2984_v11  ;;  %2437 = vmatprep.subr.bf16.mxu1 %v2984_v11  ;;  %v3155_v6 = vld [vmem:[%s3479_s2] ss:$0 sm:$0xff] }
  0x26   : > { %2418 = vmatpush3.bf16.msra.mxu0 %v2984_v11  ;;  %2438 = vmatpush3.bf16.msra.mxu1 %v2984_v11 }
  0x27   : > { %2419 = vmatprep.subr.bf16.mxu0 %v2993_v12  ;;  %2439 = vmatprep.subr.bf16.mxu1 %v2993_v12 }
  0x2a   : > { %2420 = vmatpush3.bf16.msra.mxu0 %v2993_v12  ;;  %2440 = vmatpush3.bf16.msra.mxu1 %v2993_v12 }
  0x2b   : > { %2421 = vmatprep.subr.bf16.mxu0 %v2998_v13  ;;  %2441 = vmatprep.subr.bf16.mxu1 %v2998_v13 }
  0x2e   : > { %2422 = vmatpush3.bf16.msra.mxu0 %v2998_v13  ;;  %2442 = vmatpush3.bf16.msra.mxu1 %v2998_v13 }
  0x2f   : > { %2447 = vmatprep.subr.bf16.mxu0 %v2927_v0  ;;  %2467 = vmatprep.subr.bf16.mxu1 %v2927_v0 }
  0x31   : > { %2424 = vmatmul.mubr.bf16.vlgmr.msra.gmra.mxu0 %v337_v22  ;;  %2444 = vmatmul.mubr.bf16.vlgmr.msra.gmra.mxu1 %v450_v23 }
  0x32   : > { %2448 = vmatpush3.bf16.msra.mxu0 %v2927_v0  ;;  %2468 = vmatpush3.bf16.msra.mxu1 %v2927_v0 }
  0x33   : > { %2449 = vmatprep.subr.bf16.mxu0 %v2935_v1  ;;  %2469 = vmatprep.subr.bf16.mxu1 %v2935_v1 }
  0x34   : > { %2463 = vmatprep.mubr.bf16.mxu0 %v546_v24  ;;  %2483 = vmatprep.mubr.bf16.mxu1 %v611_v25 }
  0x36   : > { %2450 = vmatpush3.bf16.msra.mxu0 %v2935_v1  ;;  %2470 = vmatpush3.bf16.msra.mxu1 %v2935_v1 }
  0x37   : > { %2451 = vmatprep.subr.bf16.mxu0 %v2948_v2  ;;  %2471 = vmatprep.subr.bf16.mxu1 %v2948_v2 }
  0x3a   : > { %2452 = vmatpush3.bf16.msra.mxu0 %v2948_v2  ;;  %2472 = vmatpush3.bf16.msra.mxu1 %v2948_v2 }
  0x3b   : > { %2453 = vmatprep.subr.bf16.mxu0 %v2960_v3  ;;  %2473 = vmatprep.subr.bf16.mxu1 %v2960_v3 }
  0x3e   : > { %2454 = vmatpush3.bf16.msra.mxu0 %v2960_v3  ;;  %2474 = vmatpush3.bf16.msra.mxu1 %v2960_v3 }
  0x3f   : > { %2455 = vmatprep.subr.bf16.mxu0 %v2975_v10  ;;  %2475 = vmatprep.subr.bf16.mxu1 %v2975_v10 }
  0x42   : > { %2456 = vmatpush3.bf16.msra.mxu0 %v2975_v10  ;;  %2476 = vmatpush3.bf16.msra.mxu1 %v2975_v10 }
  0x43   : > { %2457 = vmatprep.subr.bf16.mxu0 %v2984_v11  ;;  %2477 = vmatprep.subr.bf16.mxu1 %v2984_v11 }
  0x46   : > { %2458 = vmatpush3.bf16.msra.mxu0 %v2984_v11  ;;  %2478 = vmatpush3.bf16.msra.mxu1 %v2984_v11 }
  0x47   : > { %2459 = vmatprep.subr.bf16.mxu0 %v2993_v12  ;;  %2479 = vmatprep.subr.bf16.mxu1 %v2993_v12 }
  0x4a   : > { %2460 = vmatpush3.bf16.msra.mxu0 %v2993_v12  ;;  %2480 = vmatpush3.bf16.msra.mxu1 %v2993_v12 }
  0x4b   : > { %2461 = vmatprep.subr.bf16.mxu0 %v2998_v13  ;;  %2481 = vmatprep.subr.bf16.mxu1 %v2998_v13 }
  0x4e   : > { %2462 = vmatpush3.bf16.msra.mxu0 %v2998_v13  ;;  %2482 = vmatpush3.bf16.msra.mxu1 %v2998_v13 }
  0x4f   : > { %2277 = vmatprep.subr.bf16.mxu1 %v2675_v30  ;;  %2249 = vmatprep.subr.bf16.mxu0 %v2691_v48 }
  0x51   : > { %2464 = vmatmul.mubr.bf16.vlgmr.msra.gmra.mxu0 %v547_v31  ;;  %2484 = vmatmul.mubr.bf16.vlgmr.msra.gmra.mxu1 %v612_v32 }
  0x52   : > { %2278 = vmatpush3.bf16.msra.mxu1 %v2676_v33  ;;  %2250 = vmatpush3.bf16.msra.mxu0 %v2692_v49 }
  0x53   : > { %2279 = vmatprep.subr.bf16.mxu1 %v2677_v34  ;;  %2251 = vmatprep.subr.bf16.mxu0 %v2693_v50 }
  0x56   : > { %2280 = vmatpush3.bf16.msra.mxu1 %v2678_v35  ;;  %2252 = vmatpush3.bf16.msra.mxu0 %v2694_v51 }
  0x57   : > { %2281 = vmatprep.subr.bf16.mxu1 %v2679_v36  ;;  %2253 = vmatprep.subr.bf16.mxu0 %v2695_v52 }
  0x5a   : > { %2282 = vmatpush3.bf16.msra.mxu1 %v2680_v37  ;;  %2254 = vmatpush3.bf16.msra.mxu0 %v2696_v53 }
  0x5b   : > { %2283 = vmatprep.subr.bf16.mxu1 %v2681_v38  ;;  %2255 = vmatprep.subr.bf16.mxu0 %v2697_v54 }
  0x5e   : > { %2284 = vmatpush3.bf16.msra.mxu1 %v2682_v39  ;;  %2256 = vmatpush3.bf16.msra.mxu0 %v2698_v55 }
  0x5f   : > { %2285 = vmatprep.subr.bf16.mxu1 %v2683_v40  ;;  %2257 = vmatprep.subr.bf16.mxu0 %v2699_v56 }
  0x62   : > { %2286 = vmatpush3.bf16.msra.mxu1 %v2684_v41  ;;  %2258 = vmatpush3.bf16.msra.mxu0 %v2700_v57 }
  0x63   : > { %2287 = vmatprep.subr.bf16.mxu1 %v2685_v42  ;;  %2259 = vmatprep.subr.bf16.mxu0 %v2701_v58 }
  0x66   : > { %2288 = vmatpush3.bf16.msra.mxu1 %v2686_v43  ;;  %2260 = vmatpush3.bf16.msra.mxu0 %v2702_v59  ;;  %v1060_v43 = vld [vmem:[%s2953_s21 + $0x28] sm:$0xff] }
  0x67   : > { %2289 = vmatprep.subr.bf16.mxu1 %v2687_v44  ;;  %2261 = vmatprep.subr.bf16.mxu0 %v2703_v60  ;;  %v1061_v44 = vld [vmem:[%s2953_s21 + $0x68] sm:$0xff] }
  0x6a   : > { %2290 = vmatpush3.bf16.msra.mxu1 %v2688_v45  ;;  %2262 = vmatpush3.bf16.msra.mxu0 %v2704_v61 }
  0x6b   : > { %2291 = vmatprep.subr.bf16.mxu1 %v2689_v46  ;;  %2263 = vmatprep.subr.bf16.mxu0 %v2705_v62  ;;  %v1064_v46 = vpack.c.bf16 %v1061_v44, %v1060_v43  ;;  %v2719_v43 = vld [vmem:[%s3480_s3 + $0x148] sm:$0xff]  }
  0x6c   : > { %v2720_v44 = vld [vmem:[%s3480_s3 + $0x108] sm:$0xff]  }
  0x6e   : > { %2292 = vmatpush3.bf16.msra.mxu1 %v2690_v47  ;;  %2264 = vmatpush3.bf16.msra.mxu0 %v2706_v63 }
  0x6f   : > { %2507 = vmatprep.subr.bf16.mxu1 %v2927_v0  ;;  %2487 = vmatprep.subr.bf16.mxu0 %v2927_v0 }
  0xf1   : > { %v2425_v4 = vpop.f32.mrf.mxu0  ;;  %v2445_v5 = vpop.f32.mrf.mxu1 }
  0xf2   : > { %v494_v17 = vadd.f32 %v2445_v5, %v3155_v6  ;;  %v429_v35 = vadd.f32 %v2425_v4, %v3155_v6  ;;  %v1062_v5 = vld [vmem:[%s2953_s21 + $0xa8] sm:$0xff] }
  0xf3   : > { %v420_v7 = vpop.f32.mrf.mxu0  ;;  %v485_v8 = vpop.f32.mrf.mxu1 }
  0xf4   : > { %v421_v9 = vadd.f32 %v3155_v6, %v420_v7  ;;  %v486_v14 = vadd.f32 %v3155_v6, %v485_v8  ;;  %v502_v26 = vmul.f32 0.1, %v494_v17  ;;  %v437_v41 = vmul.f32 0.1, %v429_v35  ;;  %v1063_v7 = vld [vmem:[%s2953_s21 + $0xe8] sm:$0xff] }
  0xf5   : > { %v2426_v15 = vpop.f32.mrf.mxu0  ;;  %v2446_v16 = vpop.f32.mrf.mxu1 }
  0xf6   : > { %v435_v18 = vmul.f32 0.1, %v421_v9  ;;  %v497_v19 = vadd.f32 %v2446_v16, %v3155_v6  ;;  %v500_v22 = vmul.f32 0.1, %v486_v14  ;;  %v432_v30 = vadd.f32 %v2426_v15, %v3155_v6 }
  0xf7   : > { %v423_v20 = vpop.f32.mrf.mxu0  ;;  %v488_v21 = vpop.f32.mrf.mxu1  ;;  %v506_v36 = vmax.f32 %v494_v17, %v502_v26  ;;  %v441_v45 = vmax.f32 %v429_v35, %v437_v41  ;;  %v2710_v35 = vld [vmem:[%s3480_s3 + $0x130] sm:$0xff]  }
  0xf8   : > { %v424_v23 = vadd.f32 %v3155_v6, %v423_v20  ;;  %v489_v24 = vadd.f32 %v3155_v6, %v488_v21  ;;  %v503_v25 = vmul.f32 0.1, %v497_v19  ;;  %v439_v29 = vmax.f32 %v421_v9, %v435_v18  ;;  %v2717_v41 = vld [vmem:[%s3480_s3 + $0x150] sm:$0xff]  }
  0xf9   : > { %v504_v31 = vmax.f32 %v486_v14, %v500_v22  ;;  %v438_v39 = vmul.f32 0.1, %v432_v30  ;;  %v1065_v22 = vpack.c.bf16 %v1063_v7, %v1062_v5 }
  0xfa   : > { %v436_v27 = vmul.f32 0.1, %v424_v23  ;;  %v501_v28 = vmul.f32 0.1, %v489_v24  ;;  %v507_v32 = vmax.f32 %v497_v19, %v503_v25 }
  0xfb   : > { %v442_v42 = vmax.f32 %v432_v30, %v438_v39  ;;  %v995_v30 = vld [vmem:[%s2953_s21 + $0x20] sm:$0xff]  ;;  %v2715_v39 = vld [vmem:[%s3480_s3 + $0x158] sm:$0xff]  }
  0xfc   : > { %v440_v33 = vmax.f32 %v424_v23, %v436_v27  ;;  %v505_v34 = vmax.f32 %v489_v24, %v501_v28  ;;  %v509_v40 = vpack.c.bf16 %v507_v32, %v506_v36  ;;  %v2712_v36 = vld [vmem:[%s3480_s3 + $0x128] sm:$0xff]  }
  0xfd   : > { %v444_v47 = vpack.c.bf16 %v442_v42, %v441_v45  ;;  %v2718_v42 = vld [vmem:[%s3480_s3 + $0x110] sm:$0xff]   ;;  %v2721_v45 = vld [vmem:[%s3480_s3 + $0x140] sm:$0xff]  }
  0xfe   : > { %v443_v37 = vpack.c.bf16 %v440_v33, %v439_v29  ;;  %v508_v38 = vpack.c.bf16 %v505_v34, %v504_v31  ;;  %v996_v31 = vld [vmem:[%s2953_s21 + $0x60] sm:$0xff] }
  0xff   : > { %v999_v33 = vpack.c.bf16 %v996_v31, %v995_v30 }
 0x100   : > { %978 = vmatprep.mubr.bf16.mxu1 %v508_v38  ;;  %v2714_v38 = vld [vmem:[%s3480_s3 + $0x120] sm:$0xff]  }
 0x101   : > { %979 = vmatmul.mubr.bf16.vlgmr.msra.gmra.mxu1 %v443_v37  ;;  %v2713_v37 = vld [vmem:[%s3480_s3 + $0x160] sm:$0xff]  }
 0x102   : > { %986 = vmatprep.mubr.bf16.mxu1 %v509_v40  ;;  %2508 = vmatpush3.bf16.msra.mxu1 %v2927_v0  ;;  %v2716_v40 = vld [vmem:[%s3480_s3 + $0x118] sm:$0xff]  }
 0x103   : > { %2509 = vmatprep.subr.bf16.mxu1 %v2935_v1 }
 0x106   : > { %2510 = vmatpush3.bf16.msra.mxu1 %v2935_v1 }
 0x107   : > { %2511 = vmatprep.subr.bf16.mxu1 %v2948_v2 }
 0x109   : > { %987 = vmatmul.mubr.bf16.gmra.mxu1 %v444_v47  ;;  %v1307_v47 = vld [vmem:[%s2953_s21 + $0x30] sm:$0xff] }
 0x10a   : > { %2512 = vmatpush3.bf16.msra.mxu1 %v2948_v2  ;;  %2523 = vmatprep.mubr.bf16.mxu1 %v1064_v46  ;;  %v2722_v46 = vld [vmem:[%s3480_s3 + $0x100] sm:$0xff]  }
 0x10b   : > { %2513 = vmatprep.subr.bf16.mxu1 %v2960_v3 }
 0x10e   : > { %2514 = vmatpush3.bf16.msra.mxu1 %v2960_v3 }
 0x10f   : > { %2515 = vmatprep.subr.bf16.mxu1 %v2975_v10 }
 0x111   : > { %v2465_v48 = vpop.f32.mrf.mxu0  ;;  %v2485_v49 = vpop.f32.mrf.mxu1 }
 0x112   : > { %2516 = vmatpush3.bf16.msra.mxu1 %v2975_v10  ;;  %v656_v56 = vadd.f32 %v2485_v49, %v3155_v6  ;;  %v591_v21 = vadd.f32 %v2465_v48, %v3155_v6  ;;  %v1308_v48 = vld [vmem:[%s2953_s21 + $0x70] sm:$0xff] }
 0x113   : > { %v582_v50 = vpop.f32.mrf.mxu0  ;;  %v647_v51 = vpop.f32.mrf.mxu1  ;;  %2517 = vmatprep.subr.bf16.mxu1 %v2984_v11  ;;  %v1311_v49 = vpack.c.bf16 %v1308_v48, %v1307_v47 }
 0x114   : > { %v583_v52 = vadd.f32 %v3155_v6, %v582_v50  ;;  %v648_v53 = vadd.f32 %v3155_v6, %v647_v51  ;;  %v664_v8 = vmul.f32 0.1, %v656_v56  ;;  %v599_v28 = vmul.f32 0.1, %v591_v21  ;;  %v1309_v50 = vld [vmem:[%s2953_s21 + $0xb0] sm:$0xff] }
 0x115   : > { %v2466_v54 = vpop.f32.mrf.mxu0  ;;  %v2486_v55 = vpop.f32.mrf.mxu1  ;;  %v1310_v51 = vld [vmem:[%s2953_s21 + $0xf0] sm:$0xff] }
 0x116   : > { %2518 = vmatpush3.bf16.msra.mxu1 %v2984_v11  ;;  %v597_v57 = vmul.f32 0.1, %v583_v52  ;;  %v659_v58 = vadd.f32 %v2486_v55, %v3155_v6  ;;  %v662_v61 = vmul.f32 0.1, %v648_v53  ;;  %v594_v16 = vadd.f32 %v2466_v54, %v3155_v6 }
 0x117   : > { %v585_v59 = vpop.f32.mrf.mxu0  ;;  %v650_v60 = vpop.f32.mrf.mxu1  ;;  %2519 = vmatprep.subr.bf16.mxu1 %v2993_v12  ;;  %v668_v23 = vmax.f32 %v656_v56, %v664_v8  ;;  %v603_v32 = vmax.f32 %v591_v21, %v599_v28 }
 0x118   : > { %v586_v62 = vadd.f32 %v3155_v6, %v585_v59  ;;  %v651_v63 = vadd.f32 %v3155_v6, %v650_v60  ;;  %v665_v4 = vmul.f32 0.1, %v659_v58  ;;  %v601_v15 = vmax.f32 %v583_v52, %v597_v57 }
 0x119   : > { %v666_v17 = vmax.f32 %v648_v53, %v662_v61  ;;  %v600_v26 = vmul.f32 0.1, %v594_v16  ;;  %v1312_v52 = vpack.c.bf16 %v1310_v51, %v1309_v50  ;;  %v2759_v51 = vld [vmem:[%s3478_s1 + $0x38] sm:$0xff]  }
 0x11a   : > { %v598_v9 = vmul.f32 0.1, %v586_v62  ;;  %v663_v14 = vmul.f32 0.1, %v651_v63  ;;  %2520 = vmatpush3.bf16.msra.mxu1 %v2993_v12  ;;  %v669_v18 = vmax.f32 %v659_v58, %v665_v4 }
 0x11b   : > { %2521 = vmatprep.subr.bf16.mxu1 %v2998_v13  ;;  %v604_v29 = vmax.f32 %v594_v16, %v600_v26 }
 0x11c   : > { %v602_v19 = vmax.f32 %v586_v62, %v598_v9  ;;  %v667_v20 = vmax.f32 %v651_v63, %v663_v14  ;;  %v671_v27 = vpack.c.bf16 %v669_v18, %v668_v23 }
 0x11d   : > { %v606_v34 = vpack.c.bf16 %v604_v29, %v603_v32 }
 0x11e   : > { %v605_v24 = vpack.c.bf16 %v602_v19, %v601_v15  ;;  %v670_v25 = vpack.c.bf16 %v667_v20, %v666_v17  ;;  %2522 = vmatpush3.bf16.msra.mxu1 %v2998_v13 }
 0x11f   : > { %2527 = vmatprep.subr.bf16.mxu1 %v2927_v0 }
 0x120   : > { %833 = vmatprep.mubr.bf16.mxu0 %v670_v25 }
 0x121   : > { %834 = vmatmul.mubr.bf16.vlgmr.msra.gmra.mxu0 %v605_v24  ;;  %2524 = vmatmul.mubr.bf16.vlgmr.msra.gmra.mxu1 %v1065_v22 }
 0x122   : > { %2488 = vmatpush3.bf16.msra.mxu0 %v2927_v0  ;;  %841 = vmatprep.mubr.bf16.mxu0 %v671_v27 }
 0x123   : > { %2489 = vmatprep.subr.bf16.mxu0 %v2935_v1  ;;  %2528 = vmatpush3.bf16.msra.mxu1 %v2927_v0 }
 0x124   : > { %2529 = vmatprep.subr.bf16.mxu1 %v2935_v1  ;;  %2543 = vmatprep.mubr.bf16.mxu1 %v1311_v49 }
 0x126   : > { %2490 = vmatpush3.bf16.msra.mxu0 %v2935_v1 }
 0x127   : > { %2491 = vmatprep.subr.bf16.mxu0 %v2948_v2  ;;  %2530 = vmatpush3.bf16.msra.mxu1 %v2935_v1  ;;  %v997_v1 = vld [vmem:[%s2953_s21 + $0xa0] sm:$0xff] }
 0x128   : > { %2531 = vmatprep.subr.bf16.mxu1 %v2948_v2 }
 0x129   : > { %842 = vmatmul.mubr.bf16.gmra.mxu0 %v606_v34 }
 0x12a   : > { %2492 = vmatpush3.bf16.msra.mxu0 %v2948_v2  ;;  %2503 = vmatprep.mubr.bf16.mxu0 %v999_v33 }
 0x12b   : > { %2493 = vmatprep.subr.bf16.mxu0 %v2960_v3  ;;  %2532 = vmatpush3.bf16.msra.mxu1 %v2948_v2  ;;  %v998_v2 = vld [vmem:[%s2953_s21 + $0xe0] sm:$0xff] }
 0x12c   : > { %2533 = vmatprep.subr.bf16.mxu1 %v2960_v3 }
 0x12e   : > { %2494 = vmatpush3.bf16.msra.mxu0 %v2960_v3 }
 0x12f   : > { %2495 = vmatprep.subr.bf16.mxu0 %v2975_v10  ;;  %2534 = vmatpush3.bf16.msra.mxu1 %v2960_v3  ;;  %v1000_v3 = vpack.c.bf16 %v998_v2, %v997_v1 }
 0x130   : > { %2535 = vmatprep.subr.bf16.mxu1 %v2975_v10 }
 0x132   : > { %2496 = vmatpush3.bf16.msra.mxu0 %v2975_v10 }
 0x133   : > { %2497 = vmatprep.subr.bf16.mxu0 %v2984_v11  ;;  %2536 = vmatpush3.bf16.msra.mxu1 %v2975_v10  ;;  %v2707_v10 = vld [vmem:[%s3480_s3 + $0x178] sm:$0xff]  }
 0x134   : > { %2537 = vmatprep.subr.bf16.mxu1 %v2984_v11 }
 0x136   : > { %2498 = vmatpush3.bf16.msra.mxu0 %v2984_v11 }
 0x137   : > { %2499 = vmatprep.subr.bf16.mxu0 %v2993_v12  ;;  %2538 = vmatpush3.bf16.msra.mxu1 %v2984_v11  ;;  %v2708_v11 = vld [vmem:[%s3480_s3 + $0x138] sm:$0xff]  }
 0x138   : > { %2539 = vmatprep.subr.bf16.mxu1 %v2993_v12 }
 0x13a   : > { %2500 = vmatpush3.bf16.msra.mxu0 %v2993_v12 }
 0x13b   : > { %2501 = vmatprep.subr.bf16.mxu0 %v2998_v13  ;;  %2540 = vmatpush3.bf16.msra.mxu1 %v2993_v12  ;;  %v2709_v12 = vld [vmem:[%s3480_s3 + $0x170] sm:$0xff]  }
 0x13c   : > { %2541 = vmatprep.subr.bf16.mxu1 %v2998_v13 }
 0x13e   : > { %2502 = vmatpush3.bf16.msra.mxu0 %v2998_v13 }
 0x13f   : > { %2542 = vmatpush3.bf16.msra.mxu1 %v2998_v13  ;;  %2325 = vmatprep.subr.bf16.mxu0 %v2707_v10  ;;  %v2711_v13 = vld [vmem:[%s3480_s3 + $0x168] sm:$0xff]  }
 0x141   : > { %2504 = vmatmul.mubr.bf16.vlgmr.msra.gmra.mxu0 %v1000_v3 }
 0x142   : > { %2326 = vmatpush3.bf16.msra.mxu0 %v2708_v11  ;;  %2544 = vmatmul.mubr.bf16.vlgmr.msra.gmra.mxu1 %v1312_v52 }
 0x143   : > { %2327 = vmatprep.subr.bf16.mxu0 %v2709_v12 }
 0x146   : > { %2328 = vmatpush3.bf16.msra.mxu0 %v2710_v35 }
 0x147   : > { %2329 = vmatprep.subr.bf16.mxu0 %v2711_v13 }
 0x14a   : > { %2330 = vmatpush3.bf16.msra.mxu0 %v2712_v36 }
 0x14b   : > { %2331 = vmatprep.subr.bf16.mxu0 %v2713_v37 }
 0x14e   : > { %2332 = vmatpush3.bf16.msra.mxu0 %v2714_v38 }
 0x14f   : > { %2333 = vmatprep.subr.bf16.mxu0 %v2715_v39 }
 0x152   : > { %2334 = vmatpush3.bf16.msra.mxu0 %v2716_v40 }
 0x153   : > { %2335 = vmatprep.subr.bf16.mxu0 %v2717_v41 }
 0x156   : > { %2336 = vmatpush3.bf16.msra.mxu0 %v2718_v42 }
 0x157   : > { %2337 = vmatprep.subr.bf16.mxu0 %v2719_v43 }
 0x15a   : > { %2338 = vmatpush3.bf16.msra.mxu0 %v2720_v44 }
 0x15b   : > { %2339 = vmatprep.subr.bf16.mxu0 %v2721_v45 }
 0x15e   : > { %2340 = vmatpush3.bf16.msra.mxu0 %v2722_v46 }
 0x15f   : > { %2547 = vmatprep.subr.bf16.mxu0 %v2927_v0 }
 0x1c1   : > { %v2293_v53 = vpop.f32.mrf.mxu1 }
 0x1c3   : > { %v2294_v54 = vpop.f32.mrf.mxu1 }
 0x1c4   : > { %v2295_v55 = vadd.f32 %v2294_v54, %v2293_v53  ;;  %v2760_v53 = vld [vmem:[%s3478_s1 + $0x30] sm:$0xff]   ;;  %v1372_v54 = vld [vmem:[%s2953_s21 + $0x38] sm:$0xff] }
 0x1c5   : > { %v2296_v56 = vpop.f32.mrf.mxu1 }
 0x1c7   : > { %v2297_v57 = vpop.f32.mrf.mxu1 }
 0x1c8   : > { %v2298_v58 = vadd.f32 %v2297_v57, %v2296_v56 }
 0x1c9   : > { %v2299_v59 = vpop.f32.mrf.mxu1 }
 0x1cb   : > { %v2300_v60 = vpop.f32.mrf.mxu1 }
 0x1cc   : > { %v2301_v61 = vadd.f32 %v2300_v60, %v2299_v59  ;;  %v2762_v60 = vld [vmem:[%s3478_s1 + $0x20] sm:$0xff]  }
 0x1cd   : > { %v2302_v62 = vpop.f32.mrf.mxu1 }
 0x1cf   : > { %v2303_v63 = vpop.f32.mrf.mxu1 }
 0x1d0   : > { %v2304_v0 = vadd.f32 %v2303_v63, %v2302_v62  ;;  %v2764_v62 = vld [vmem:[%s3478_s1 + $0x10] sm:$0xff]   ;;  %v2765_v63 = vld [vmem:[%s3478_s1 + $0x8] sm:$0xff]  }
 0x1e1   : > { %v2265_v4 = vpop.f32.mrf.mxu0  ;;  %v2525_v5 = vpop.f32.mrf.mxu1 }
 0x1e2   : > { %v1109_v3 = vadd.f32 %v2525_v5, %v3155_v6  ;;  %v2766_v5 = vld [vmem:[%s3478_s1] sm:$0xff]  }
 0x1e3   : > { %v2266_v7 = vpop.f32.mrf.mxu0  ;;  %v1100_v8 = vpop.f32.mrf.mxu1 }
 0x1e4   : > { %v2267_v9 = vadd.f32 %v2266_v7, %v2265_v4  ;;  %v1101_v14 = vadd.f32 %v3155_v6, %v1100_v8  ;;  %v1117_v13 = vmul.f32 0.1, %v1109_v3  ;;  %v1375_v4 = vld [vmem:[%s2953_s21 + $0xf8] sm:$0xff] }
 0x1e5   : > { %v2268_v15 = vpop.f32.mrf.mxu0  ;;  %v2526_v16 = vpop.f32.mrf.mxu1  ;;  %v2723_v8 = vld [vmem:[%s3480_s3 + $0x1f8] sm:$0xff]  }
 0x1e6   : > { %v3281_v17 = vadd.f32 %v2295_v55, %v2267_v9  ;;  %v1115_v18 = vmul.f32 0.1, %v1101_v14  ;;  %v1112_v10 = vadd.f32 %v2526_v16, %v3155_v6  ;;  %v1121_v42 = vmax.f32 %v1109_v3, %v1117_v13  ;;  %v1373_v55 = vld [vmem:[%s2953_s21 + $0x78] sm:$0xff]  ;;  %2373 = vmatprep.subr.bf16.mxu1 %v2723_v8  ;;  %v2727_v16 = vld [vmem:[%s3480_s3 + $0x1e8] sm:$0xff]  }
 0x1e7   : > { %v2269_v19 = vpop.f32.mrf.mxu0  ;;  %v1103_v20 = vpop.f32.mrf.mxu1  ;;  %v1376_v57 = vpack.c.bf16 %v1373_v55, %v1372_v54  ;;  %v2724_v9 = vld [vmem:[%s3480_s3 + $0x1b8] sm:$0xff]  }
 0x1e8   : > { %v2270_v21 = vadd.f32 %v2269_v19, %v2268_v15  ;;  %v1104_v22 = vadd.f32 %v3155_v6, %v1103_v20  ;;  %v1119_v25 = vmax.f32 %v1101_v14, %v1115_v18  ;;  %v1118_v36 = vmul.f32 0.1, %v1112_v10  ;;  %2374 = vmatpush3.bf16.msra.mxu1 %v2724_v9  ;;  %v2725_v14 = vld [vmem:[%s3480_s3 + $0x1f0] sm:$0xff]   ;;  %v2728_v18 = vld [vmem:[%s3480_s3 + $0x1a8] sm:$0xff]   ;;  %v2729_v19 = vld [vmem:[%s3480_s3 + $0x1e0] sm:$0xff]  }
 0x1e9   : > { %v2271_v23 = vpop.f32.mrf.mxu0  ;;  %v2726_v15 = vld [vmem:[%s3480_s3 + $0x1b0] sm:$0xff]   ;;  %2375 = vmatprep.subr.bf16.mxu1 %v2725_v14  ;;  %v2730_v20 = vld [vmem:[%s3480_s3 + $0x1a0] sm:$0xff]  }
 0x1ea   : > { %v3284_v24 = vadd.f32 %v2298_v58, %v2270_v21  ;;  %v1116_v26 = vmul.f32 0.1, %v1104_v22  ;;  %v1122_v43 = vmax.f32 %v1112_v10, %v1118_v36  ;;  %v2761_v58 = vld [vmem:[%s3478_s1 + $0x28] sm:$0xff]   ;;  %v2731_v21 = vld [vmem:[%s3480_s3 + $0x1d8] sm:$0xff]  }
 0x1eb   : > { %v2272_v27 = vpop.f32.mrf.mxu0 }
 0x1ec   : > { %v2273_v28 = vadd.f32 %v2272_v27, %v2271_v23  ;;  %v1120_v29 = vmax.f32 %v1104_v22, %v1116_v26  ;;  %v1124_v49 = vpack.c.bf16 %v1122_v43, %v1121_v42  ;;  %2376 = vmatpush3.bf16.msra.mxu1 %v2726_v15  ;;  %v2732_v22 = vld [vmem:[%s3480_s3 + $0x198] sm:$0xff]   ;;  %v2733_v23 = vld [vmem:[%s3480_s3 + $0x1d0] sm:$0xff]   ;;  %v2735_v26 = vld [vmem:[%s3480_s3 + $0x1c8] sm:$0xff]  }
 0x1ed   : > { %v2274_v30 = vpop.f32.mrf.mxu0  ;;  %2377 = vmatprep.subr.bf16.mxu1 %v2727_v16  ;;  %v2736_v27 = vld [vmem:[%s3480_s3 + $0x188] sm:$0xff]  }
 0x1ee   : > { %v3286_v31 = vadd.f32 %v2301_v61, %v2273_v28  ;;  %v1123_v32 = vpack.c.bf16 %v1120_v29, %v1119_v25  ;;  %v2763_v61 = vld [vmem:[%s3478_s1 + $0x18] sm:$0xff]   ;;  %v2734_v25 = vld [vmem:[%s3480_s3 + $0x190] sm:$0xff]   ;;  %v2737_v28 = vld [vmem:[%s3480_s3 + $0x1c0] sm:$0xff]  }
 0x1ef   : > { %v2275_v33 = vpop.f32.mrf.mxu0  ;;  %v2738_v29 = vld [vmem:[%s3480_s3 + $0x180] sm:$0xff]  }
 0x1f0   : > { %v2276_v34 = vadd.f32 %v2275_v33, %v2274_v30  ;;  %1286 = vmatprep.mubr.bf16.mxu0 %v1123_v32  ;;  %2378 = vmatpush3.bf16.msra.mxu1 %v2728_v18  ;;  %v2740_v18 = vld [vmem:[%s3482_s5 + $0x10] sm:$0xff]  }
 0x1f1   : > { %2379 = vmatprep.subr.bf16.mxu1 %v2729_v19  ;;  %v2741_v19 = vld [vmem:[%s3482_s5 + $0x8] sm:$0xff]  }
 0x1f2   : > { %v3288_v1 = vadd.f32 %v2304_v0, %v2276_v34  ;;  %v1374_v0 = vld [vmem:[%s2953_s21 + $0xb8] sm:$0xff] }
 0x1f3   : > { %v1377_v7 = vpack.c.bf16 %v1375_v4, %v1374_v0 }
 0x1f4   : > { %2380 = vmatpush3.bf16.msra.mxu1 %v2730_v20  ;;  %v2742_v20 = vld [vmem:[%s3482_s5] sm:$0xff]  }
 0x1f5   : > { %2381 = vmatprep.subr.bf16.mxu1 %v2731_v21 }
 0x1f8   : > { %2382 = vmatpush3.bf16.msra.mxu1 %v2732_v22 }
 0x1f9   : > { %2383 = vmatprep.subr.bf16.mxu1 %v2733_v23 }
 0x1fc   : > { %2384 = vmatpush3.bf16.msra.mxu1 %v2734_v25  ;;  %v2180_v25 = vld [vmem:[%s3481_s4] ss:$0 sm:$0xff] }
 0x1fd   : > { %2385 = vmatprep.subr.bf16.mxu1 %v2735_v26 }
 0x200   : > { %2386 = vmatpush3.bf16.msra.mxu1 %v2736_v27 }
 0x201   : > { %v2505_v2 = vpop.f32.mrf.mxu0  ;;  %2387 = vmatprep.subr.bf16.mxu1 %v2737_v28 }
 0x202   : > { %v1044_v44 = vadd.f32 %v2505_v2, %v3155_v6 }
 0x203   : > { %v1035_v11 = vpop.f32.mrf.mxu0 }
 0x204   : > { %v1036_v12 = vadd.f32 %v3155_v6, %v1035_v11  ;;  %v1052_v50 = vmul.f32 0.1, %v1044_v44  ;;  %2388 = vmatpush3.bf16.msra.mxu1 %v2738_v29 }
 0x205   : > { %v2506_v35 = vpop.f32.mrf.mxu0 }
 0x206   : > { %v1050_v38 = vmul.f32 0.1, %v1036_v12  ;;  %v1047_v40 = vadd.f32 %v2506_v35, %v3155_v6  ;;  %v1056_v56 = vmax.f32 %v1044_v44, %v1052_v50 }
 0x207   : > { %v1038_v37 = vpop.f32.mrf.mxu0 }
 0x208   : > { %v1039_v39 = vadd.f32 %v3155_v6, %v1038_v37  ;;  %v1054_v45 = vmax.f32 %v1036_v12, %v1050_v38  ;;  %v1053_v47 = vmul.f32 0.1, %v1047_v40 }
 0x20a   : > { %v1051_v41 = vmul.f32 0.1, %v1039_v39  ;;  %v1057_v52 = vmax.f32 %v1047_v40, %v1053_v47 }
 0x20c   : > { %v1055_v46 = vmax.f32 %v1039_v39, %v1051_v41  ;;  %v1059_v59 = vpack.c.bf16 %v1057_v52, %v1056_v56  ;;  %v2545_v41 = vpop.f32.mrf.mxu1 }
 0x20e   : > { %v1058_v48 = vpack.c.bf16 %v1055_v46, %v1054_v45 }
 0x210   : > { %1287 = vmatmul.mubr.bf16.vlgmr.msra.gmra.mxu0 %v1058_v48 }
 0x211   : > { %2548 = vmatpush3.bf16.msra.mxu0 %v2759_v51  ;;  %1294 = vmatprep.mubr.bf16.mxu0 %v1124_v49 }
 0x212   : > { %2549 = vmatprep.subr.bf16.mxu0 %v2760_v53 }
 0x215   : > { %2550 = vmatpush3.bf16.msra.mxu0 %v2760_v53 }
 0x216   : > { %2551 = vmatprep.subr.bf16.mxu0 %v2761_v58 }
 0x218   : > { %1295 = vmatmul.mubr.bf16.gmra.mxu0 %v1059_v59 }
 0x219   : > { %2552 = vmatpush3.bf16.msra.mxu0 %v2761_v58  ;;  %2563 = vmatprep.mubr.bf16.mxu0 %v1376_v57  ;;  %v1356_v57 = vadd.f32 %v2545_v41, %v3155_v6 }
 0x21a   : > { %2553 = vmatprep.subr.bf16.mxu0 %v2762_v60 }
 0x21d   : > { %2554 = vmatpush3.bf16.msra.mxu0 %v2762_v60 }
 0x21e   : > { %2555 = vmatprep.subr.bf16.mxu0 %v2763_v61 }
 0x221   : > { %2556 = vmatpush3.bf16.msra.mxu0 %v2763_v61 }
 0x222   : > { %2557 = vmatprep.subr.bf16.mxu0 %v2764_v62 }
 0x225   : > { %2558 = vmatpush3.bf16.msra.mxu0 %v2764_v62 }
 0x226   : > { %2559 = vmatprep.subr.bf16.mxu0 %v2765_v63 }
 0x229   : > { %2560 = vmatpush3.bf16.msra.mxu0 %v2765_v63 }
 0x22a   : > { %2561 = vmatprep.subr.bf16.mxu0 %v2766_v5 }
 0x22d   : > { %2562 = vmatpush3.bf16.msra.mxu0 %v2766_v5  ;;  %v1364_v5 = vmul.f32 0.1, %v1356_v57 }
 0x22f   : > { %v1368_v14 = vmax.f32 %v1356_v57, %v1364_v5 }
 0x230   : > { %2564 = vmatmul.mubr.bf16.vlgmr.msra.gmra.mxu0 %v1377_v7 }
 0x2d0   : > { %v2341_v30 = vpop.f32.mrf.mxu0 }
 0x2d2   : > { %v2342_v32 = vpop.f32.mrf.mxu0 }
 0x2d3   : > { %v2343_v33 = vadd.f32 %v2342_v32, %v2341_v30 }
 0x2d4   : > { %v2344_v34 = vpop.f32.mrf.mxu0 }
 0x2d5   : > { %v3373_v2 = vadd.f32 %v2343_v33, %v3281_v17  ;;  %v1347_v17 = vpop.f32.mrf.mxu1 }
 0x2d6   : > { %v2345_v3 = vpop.f32.mrf.mxu0  ;;  %v1348_v45 = vadd.f32 %v3155_v6, %v1347_v17 }
 0x2d7   : > { %v2346_v10 = vadd.f32 %v2345_v3, %v2344_v34  ;;  %v2546_v42 = vpop.f32.mrf.mxu1 }
 0x2d8   : > { %v2347_v11 = vpop.f32.mrf.mxu0  ;;  %v1362_v50 = vmul.f32 0.1, %v1348_v45  ;;  %v1359_v59 = vadd.f32 %v2546_v42, %v3155_v6 }
 0x2d9   : > { %v3376_v12 = vadd.f32 %v2346_v10, %v3284_v24  ;;  %v1350_v43 = vpop.f32.mrf.mxu1 }
 0x2da   : > { %v2348_v35 = vpop.f32.mrf.mxu0  ;;  %v1351_v24 = vadd.f32 %v3155_v6, %v1350_v43  ;;  %v1366_v58 = vmax.f32 %v1348_v45, %v1362_v50  ;;  %v1365_v7 = vmul.f32 0.1, %v1359_v59 }
 0x2db   : > { %v2349_v13 = vadd.f32 %v2348_v35, %v2347_v11 }
 0x2dc   : > { %v2350_v36 = vpop.f32.mrf.mxu0  ;;  %v1369_v15 = vmax.f32 %v1359_v59, %v1365_v7 }
 0x2dd   : > { %v3379_v37 = vadd.f32 %v2349_v13, %v3286_v31 }
 0x2de   : > { %v2351_v38 = vpop.f32.mrf.mxu0  ;;  %v1371_v16 = vpack.c.bf16 %v1369_v15, %v1368_v14 }
 0x2df   : > { %v2352_v39 = vadd.f32 %v2351_v38, %v2350_v36 }
 0x2e1   : > { %v3382_v40 = vadd.f32 %v2352_v39, %v3288_v1  ;;  %v1363_v1 = vmul.f32 0.1, %v1351_v24 }
 0x2e3   : > { %v1367_v60 = vmax.f32 %v1351_v24, %v1363_v1 }
 0x2e5   : > { %v1370_v8 = vpack.c.bf16 %v1367_v60, %v1366_v58 }
 0x2f0   : > { %v2565_v44 = vpop.f32.mrf.mxu0 }
 0x2f1   : > { %v1421_v31 = vadd.f32 %v2565_v44, %v3155_v6 }
 0x2f2   : > { %v1412_v46 = vpop.f32.mrf.mxu0 }
 0x2f3   : > { %v1413_v47 = vadd.f32 %v3155_v6, %v1412_v46  ;;  %v1429_v55 = vmul.f32 0.1, %v1421_v31 }
 0x2f4   : > { %v2566_v48 = vpop.f32.mrf.mxu0 }
 0x2f5   : > { %v1424_v49 = vadd.f32 %v2566_v48, %v3155_v6  ;;  %v1427_v52 = vmul.f32 0.1, %v1413_v47  ;;  %v1433_v0 = vmax.f32 %v1421_v31, %v1429_v55 }
 0x2f6   : > { %v1415_v51 = vpop.f32.mrf.mxu0 }
 0x2f7   : > { %v1430_v53 = vmul.f32 0.1, %v1424_v49  ;;  %v1416_v54 = vadd.f32 %v3155_v6, %v1415_v51  ;;  %v1431_v61 = vmax.f32 %v1413_v47, %v1427_v52  ;;  %v2739_v6 = vld [vmem:[%s3482_s5 + $0x18] sm:$0xff]  }
 0x2f8   : > { %2567 = vmatprep.subr.bf16.mxu0 %v2739_v6 }
 0x2f9   : > { %v1428_v56 = vmul.f32 0.1, %v1416_v54  ;;  %v1434_v62 = vmax.f32 %v1424_v49, %v1430_v53  ;;  %2568 = vmatpush3.bf16.msra.mxu0 %v2739_v6 }
 0x2fa   : > { %2569 = vmatprep.subr.bf16.mxu0 %v2740_v18 }
 0x2fb   : > { %v1432_v63 = vmax.f32 %v1416_v54, %v1428_v56  ;;  %v1436_v9 = vpack.c.bf16 %v1434_v62, %v1433_v0 }
 0x2fd   : > { %v1435_v4 = vpack.c.bf16 %v1432_v63, %v1431_v61  ;;  %2570 = vmatpush3.bf16.msra.mxu0 %v2740_v18 }
 0x2fe   : > { %2571 = vmatprep.subr.bf16.mxu0 %v2741_v19 }
 0x2ff   : > { %1598 = vmatprep.mubr.bf16.mxu1 %v1435_v4 }
 0x300   : > { %1599 = vmatmul.mubr.bf16.vlgmr.msra.gmra.mxu1 %v1370_v8 }
 0x301   : > { %1606 = vmatprep.mubr.bf16.mxu1 %v1436_v9  ;;  %2572 = vmatpush3.bf16.msra.mxu0 %v2741_v19 }
 0x302   : > { %2573 = vmatprep.subr.bf16.mxu0 %v2742_v20 }
 0x305   : > { %2574 = vmatpush3.bf16.msra.mxu0 %v2742_v20 }
 0x308   : > { %1607 = vmatmul.mubr.bf16.gmra.mxu1 %v1371_v16 }
 0x3c0   : > { %v2389_v21 = vpop.f32.mrf.mxu1 }
 0x3c2   : > { %v2390_v22 = vpop.f32.mrf.mxu1 }
 0x3c3   : > { %v2391_v23 = vadd.f32 %v2390_v22, %v2389_v21 }
 0x3c4   : > { %v2392_v26 = vpop.f32.mrf.mxu1 }
 0x3c5   : > { %v1615_v27 = vadd.f32 %v2391_v23, %v3373_v2 }
 0x3c6   : > { %v2393_v28 = vpop.f32.mrf.mxu1 }
 0x3c7   : > { %v1626_v29 = vadd.f32 %v2180_v25, %v1615_v27  ;;  %v2394_v30 = vadd.f32 %v2393_v28, %v2392_v26 }
 0x3c8   : > { %v2395_v32 = vpop.f32.mrf.mxu1 }
 0x3c9   : > { %v1616_v33 = vadd.f32 %v2394_v30, %v3376_v12  ;;  %v1630_v3 = vmul.f32 0.1, %v1626_v29 }
 0x3ca   : > { %v2396_v34 = vpop.f32.mrf.mxu1 }
 0x3cb   : > { %v1627_v10 = vadd.f32 %v2180_v25, %v1616_v33  ;;  %v2397_v11 = vadd.f32 %v2396_v34, %v2395_v32  ;;  %v1634_v39 = vmax.f32 %v1626_v29, %v1630_v3 }
 0x3cc   : > { %v2398_v35 = vpop.f32.mrf.mxu1 }
 0x3cd   : > { %v1631_v13 = vmul.f32 0.1, %v1627_v10  ;;  %v1617_v36 = vadd.f32 %v2397_v11, %v3379_v37  ;;  %v2181_v37 = vld [vmem:[%s3483_s6] ss:$0 sm:$0xff] }
 0x3ce   : > { %v2399_v38 = vpop.f32.mrf.mxu1 }
 0x3cf   : > { %v1635_v41 = vmax.f32 %v1627_v10, %v1631_v13  ;;  %v1628_v17 = vadd.f32 %v2180_v25, %v1617_v36  ;;  %v2400_v42 = vadd.f32 %v2399_v38, %v2398_v35 }
 0x3d1   : > { %v1618_v2 = vadd.f32 %v2400_v42, %v3382_v40  ;;  %v1638_v43 = vpack.c.bf16 %v1635_v41, %v1634_v39  ;;  %v1632_v44 = vmul.f32 0.1, %v1628_v17 }
 0x3d3   : > { %v1629_v45 = vadd.f32 %v2180_v25, %v1618_v2  ;;  %2575 = vmatprep.mubr.msk.bf16.mxu0 %vm1679_vm0, %v1638_v43  ;;  %v1636_v24 = vmax.f32 %v1628_v17, %v1632_v44 }
 0x3d5   : > { %v1633_v12 = vmul.f32 0.1, %v1629_v45 }
 0x3d7   : > { %v1637_v46 = vmax.f32 %v1629_v45, %v1633_v12 }
 0x3d9   : > { %v1639_v47 = vpack.c.bf16 %v1637_v46, %v1636_v24 }
 0x3db   : > { %2576 = vmatmul.mubr.msk.bf16.vlgmr.msra.gmra.mxu0 %vm1679_vm0, %v1639_v47 }
 0x49b   : > { %v2577_v48 = vpop.f32.mrf.mxu0 }
 0x49c   : > { %v1729_v31 = vadd.f32 %v2577_v48, %v2181_v37 }
 0x49d   : > { %v1720_v49 = vpop.f32.mrf.mxu0 }
 0x49e   : > { %v1721_v50 = vadd.f32 %v2181_v37, %v1720_v49  ;;  %1739 = vmax.xlane.f32.xlu1 %v1729_v31 }
 0x49f   : > { %v2578_v1 = vpop.f32.mrf.mxu0 }
 0x4a0   : > { %v1732_v40 = vadd.f32 %v2578_v1, %v2181_v37  ;;  %1735 = vmax.xlane.f32.xlu0 %v1721_v50 }
 0x4a1   : > { %v1723_v51 = vpop.f32.mrf.mxu0 }
 0x4a2   : > { %v1724_v52 = vadd.f32 %v2181_v37, %v1723_v51  ;;  %1741 = vmax.xlane.f32.xlu1 %v1732_v40 }
 0x4a4   : > { %1737 = vmax.xlane.f32.xlu0 %v1724_v52 }
 0x527   : > { %v1740_v53 = vpop.xlane.xlu1 %1739 }
 0x528   : > { %v1745_v54 = vsub.f32 %v1729_v31, %v1740_v53 }
 0x529   : > { %v1736_v55 = vpop.xlane.xlu0 %1735 }
 0x52a   : > { %v1743_v56 = vsub.f32 %v1721_v50, %v1736_v55  ;;  %v1751_v59 = vmul.f32 1.442695, %v1745_v54 }
 0x52b   : > { %v1742_v57 = vpop.xlane.xlu1 %1741 }
 0x52c   : > { %v1747_v58 = vmul.f32 1.442695, %v1743_v56  ;;  %v1746_v61 = vsub.f32 %v1732_v40, %v1742_v57 }
 0x52d   : > { %v1738_v60 = vpop.xlane.xlu0 %1737 }
 0x52e   : > { %2743 = vpow2.f32 %v1747_v58  ;;  %v1744_v62 = vsub.f32 %v1724_v52, %v1738_v60  ;;  %v1753_v0 = vmul.f32 1.442695, %v1746_v61 }
 0x52f   : > { %2745 = vpow2.f32 %v1751_v59 }
 0x530   : > { %v1749_v63 = vmul.f32 1.442695, %v1744_v62 }
 0x532   : > { %2747 = vpow2.f32 %v1749_v63 }
 0x533   : > { %2749 = vpow2.f32 %v1753_v0 }
 0x53b   : > { %v2744_v4 = vpop.eup %2743 }
 0x53c   : > { %1755 = vadd.xlane.f32.xlu0 %v2744_v4  ;;  %v2746_v5 = vpop.eup %2745 }
 0x53f   : > { %v2748_v7 = vpop.eup %2747 }
 0x540   : > { %1759 = vadd.xlane.f32.xlu0 %v2746_v5  ;;  %1757 = vadd.xlane.f32.xlu1 %v2748_v7  ;;  %v2750_v8 = vpop.eup %2749 }
 0x544   : > { %1761 = vadd.xlane.f32.xlu1 %v2750_v8 }
 0x5c5   : > { %v1756_v9 = vpop.xlane.xlu0 %1755 }
 0x5c6   : > { %2751 = vrcp.f32 %v1756_v9 }
 0x5c9   : > { %v1758_v14 = vpop.xlane.xlu1 %1757  ;;  %v1760_v15 = vpop.xlane.xlu0 %1759 }
 0x5ca   : > { %2753 = vrcp.f32 %v1758_v14 }
 0x5cb   : > { %2755 = vrcp.f32 %v1760_v15 }
 0x5cd   : > { %v1762_v16 = vpop.xlane.xlu1 %1761 }
 0x5ce   : > { %2757 = vrcp.f32 %v1762_v16 }
 0x5d3   : > { %v2752_v6 = vpop.eup %2751 }
 0x5d4   : > { %v1767_v18 = vmul.f32 %v2752_v6, %v2744_v4 }
 0x5d6   : > { %1771 = vst [vmem:[%s3415_s26] sm:$0xff] %v1767_v18 }
 0x5d7   : > { %v2754_v19 = vpop.eup %2753 }
 0x5d8   : > { %v2756_v20 = vpop.eup %2755  ;;  %v1768_v21 = vmul.f32 %v2754_v19, %v2748_v7 }
 0x5d9   : > { %v1769_v22 = vmul.f32 %v2756_v20, %v2746_v5 }
 0x5da   : > { %1772 = vst [vmem:[%s3415_s26 + $0x8] sm:$0xff] %v1768_v21  ;;  %1781 = sbr.rel (!%p2920_p4) target bundleno = 1542 (0x606), region = 52 }
 0x5db   : > { %v2758_v23 = vpop.eup %2757  ;;  %1773 = vst [vmem:[%s3415_s26 + $0x10] sm:$0xff] %v1769_v22 }
 0x5dc   : > { %v1770_v25 = vmul.f32 %v2758_v23, %v2750_v8 }
 0x5de   : > { %1774 = vst [vmem:[%s3415_s26 + $0x18] sm:$0xff] %v1770_v25 }
 0x5df   : > { %s3493_s24 = smov (!%p1784_p8, %s1783_s24), 4 }
 0x5e0   : > { %s2190_s13 = sshll.u32 %s3493_s24, 7 }
 0x5e1   : > { %p2193_p9 = scmp.eq.s32.totalorder %s2190_s13, 0 }
 0x5e2   : > { %s3434_s14 = sshrl.u32 (!%p2193_p9), %s3493_s24, 2 }
 0x5e3   : > { %1792 = sbr.rel (%p2193_p9) target bundleno = 1542 (0x606), region = 56  ;;  %p2194_p10 = scmp.le.s32.totalorder (!%p2193_p9), %s3434_s14, 0 }
 0x5e8   : > { %1959 = sbr.rel (%p2194_p10) target bundleno = 1525 (0x5f5), region = 135  ;;  %s3486_s27 = smov (!%p2194_p10), %s3428_s11 }
 0x5e9   : > { %s3487_s9 = smov (!%p2194_p10), %s3415_s26  ;;  %s3443_s12 = smov (!%p2194_p10), 0  }
 0x5ea   : > { %s2835_s21 = smov (!%p2194_p10), 0  }
 0x5ed LB: >> { %v1861_v26 = vld [vmem:[%s2829_s9] sm:$0xff]  ;;  %v1863_v27 = vld [vmem:[%s2829_s9 + $0x8] sm:$0xff]  ;;  %v1865_v28 = vld [vmem:[%s2829_s9 + $0x10] sm:$0xff]  ;;  %s1869_s15 = sadd.s32 1, %s2833_s12  ;;  %s1855_s21 = sadd.s32 1, %s2837_s21   ;;  %s2837_s21 = sphi %s2835_s21, %s1855_s21   ;;  %s2833_s12 = sphi %s3443_s12, %s3488_s12   ;;  %s2829_s9 = sphi %s3487_s9, %s1874_s9   ;;  %s2825_s27 = sphi %s3486_s27, %s1875_s27  }
 0x5ee   : >> { %1862 = vst [vmem:[%s2825_s27] sm:$0xff] %v1861_v26  ;;  %1864 = vst [vmem:[%s2825_s27 + $0x8] sm:$0xff] %v1863_v27  ;;  %v1867_v29 = vld [vmem:[%s2829_s9 + $0x18] sm:$0xff]  ;;  %p1870_p11 = scmp.ge.s32.totalorder %s1869_s15, %s3434_s14  ;;  %p1854_p12 = scmp.ge.s32.totalorder %s1855_s21, %s3434_s14 }
 0x5ef   : >> { %1866 = vst [vmem:[%s2825_s27 + $0x10] sm:$0xff] %v1865_v28  ;;  %1868 = vst [vmem:[%s2825_s27 + $0x18] sm:$0xff] %v1867_v29 }
 0x5f0   : >> { %s3495_s15 = smov (%p1870_p11, %s1869_s15), 0  ;;  %1857 = sbr.rel (!%p1854_p12) target bundleno = 1517 (0x5ed), region = 141 }
 0x5f1   : >> { %s2195_s16 = sshll.u32 %s3495_s15, 5  ;;  %s3488_s12 = smov %s3495_s15 }
 0x5f2   : >> { %s1874_s9 = scalar_lea.vmem %s3415_s26, %s2195_s16 [#allocation2]   ;;  %s1875_s27 = scalar_lea.vmem %s3428_s11, %s2195_s16  }
 0x5f5 PF: > { %s3459_s17 = sand.u32 3, %s3493_s24   ;;  %s2207_s18 = sshll.u32 %s3434_s14, 5 }
 0x5f6   : > { %s1880_s19 = scalar_lea.vmem %s3415_s26, %s2207_s18 [#allocation2]   ;;  %s1882_s20 = scalar_lea.vmem %s3428_s11, %s2207_s18  }
 0x5f7   : > { %p2200_p13 = scmp.le.s32.totalorder %s3459_s17, 0 }
 0x5f8   : > { %s2839_s22 = smov (!%p2200_p13), %s1882_s20   ;;  %s2843_s23 = smov (!%p2200_p13), %s1880_s19  }
 0x5f9   : > { %1973 = sbr.rel (%p2200_p13) target bundleno = 1542 (0x606), region = 146  ;;  %s2847_s29 = smov (!%p2200_p13), 0  }
 0x5fa   : > { %s2851_s30 = smov (!%p2200_p13), 0  }
 0x5fe LB: >> { %v1892_v30 = vld [vmem:[%s2845_s23] sm:$0xff]  ;;  %s1894_s24 = sadd.s32 1, %s2849_s29  ;;  %s1886_s30 = sadd.s32 1, %s2853_s30   ;;  %s2853_s30 = sphi %s2851_s30, %s1886_s30   ;;  %s2849_s29 = sphi %s2847_s29, %s2848_s29   ;;  %s2845_s23 = sphi %s2843_s23, %s1899_s23   ;;  %s2841_s22 = sphi %s2839_s22, %s1900_s22  }
 0x5ff   : >> { %1893 = vst [vmem:[%s2841_s22] sm:$0xff] %v1892_v30  ;;  %p1895_p0 = scmp.ge.s32.totalorder %s1894_s24, %s3459_s17  ;;  %p1885_p1 = scmp.ge.s32.totalorder %s1886_s30, %s3459_s17 }
 0x601   : >> { %s3497_s24 = smov (%p1895_p0, %s1894_s24), 0  ;;  %1888 = sbr.rel (!%p1885_p1) target bundleno = 1534 (0x5fe), region = 152 }
 0x602   : >> { %s2201_s26 = sshll.u32 %s3497_s24, 3  ;;  %s2848_s29 = smov %s3497_s24  }
 0x603   : >> { %s1899_s23 = scalar_lea.vmem %s1880_s19, %s2201_s26 [#allocation2]   ;;  %s1900_s22 = scalar_lea.vmem %s1882_s20, %s2201_s26  }
 0x606 PF: > { %p14_p2 = scmp.ge.s32.totalorder %s2910_s28, 4   ;;  %s3489_s24 = smov %s2817_s25 }
 0x607   : > { %s3490_s25 = smov %s2918_s8  ;;  %s3491_s26 = smov %s2910_s28 }
 0x608   :  { %16 = sbr.rel (!%p14_p2) target bundleno = 2 (0x2), region = 163 }

</bundles_post_ra>
